<compile_context>
chip_gen: v7x
topology: tpu7x:2x2x1
jax: 0.10.0
libtpu: 0.0.40
codegen_flags: <defaults>
</compile_context>

<pallas_src>
import functools

import jax
import jax.numpy as jnp
import numpy as np
from jax.experimental import pallas as pl

# ---------------- config (small synthetic shapes) ----------------
B = 2             # batch size
N = 16            # bag size (instances / patches)
D = 32            # feature dim (feat_ext = Identity -> feat_dim = D)
HID = 32          # hidden_dim (module default: hidden_dim = feat_dim)
ATT = 64          # attention dim
L = 4             # n_gcn_layers
LN_EPS = 1e-5

assert D == HID, "packed GCN/MLP weights assume hidden_dim == feat_dim (module default)"


def _patch_gcn_kernel(x_ref, adj_ref, gcn_w_ref, gcn_ln_ref, mlp_w_ref,
                      att_w1_ref, head_ref, out_ref):
    bf16 = jnp.bfloat16
    f32 = jnp.float32

    x3 = x_ref[...]                                   # (B, N, D) f32
    a_bf = adj_ref[...].astype(bf16)                  # (B, N, N) bf16 MXU operand
    head = head_ref[...]                              # (8, 128) packed vectors

    Bb, Nn, Dd = x3.shape
    x2 = x3.reshape(Bb * Nn, Dd)                      # (B*N, D); D == HID

    # MLP-input accumulation replaces concat([X, H1..H4]) @ mlp_w:
    #   hm_pre = sum_l feats_l @ mlp_w_seg[l]
    hm_pre = jnp.dot(x2.astype(bf16), mlp_w_ref[0].astype(bf16),
                     preferred_element_type=f32)      # (B*N, HID)

    h2 = x2                                           # (B*N, HID) f32
    for l in range(L):                                # static unroll
        # GCNConv(add_self_loops=True, learn_weights=True): msg = A @ h + h
        h3 = h2.reshape(Bb, Nn, HID)
        msg3 = jnp.einsum('bij,bjh->bih', a_bf, h3.astype(bf16),
                          preferred_element_type=f32) + h3
        msg2 = msg3.reshape(Bb * Nn, HID)

        ln = gcn_ln_ref[l]                            # (3, HID): [bias, gamma, beta]
        hl = jnp.dot(msg2.astype(bf16), gcn_w_ref[l].astype(bf16),
                     preferred_element_type=f32) + ln[0:1, :]

        # LayerNorm over features (fp32, elementwise affine)
        mu = jnp.mean(hl, axis=-1, keepdims=True)
        var = jnp.mean((hl - mu) * (hl - mu), axis=-1, keepdims=True)
        hl = (hl - mu) * jax.lax.rsqrt(var + LN_EPS)
        hl = hl * ln[1:2, :] + ln[2:3, :]

        h2 = jnp.maximum(hl, 0.0)                     # ReLU (dropout = 0)
        hm_pre = hm_pre + jnp.dot(h2.astype(bf16), mlp_w_ref[l + 1].astype(bf16),
                                  preferred_element_type=f32)

    # MLP (depth 1): Linear -> ReLU
    hm = jnp.maximum(hm_pre + head[0:1, :HID], 0.0)   # (B*N, HID)

    # Attention pooling: f = fc2(tanh(fc1(hm)))
    s = jnp.tanh(jnp.dot(hm.astype(bf16), att_w1_ref[...].astype(bf16),
                         preferred_element_type=f32) + head[1:2, :ATT])       # (B*N, ATT)
    f2 = jnp.sum(s * head[2:3, :ATT], axis=-1, keepdims=True) + head[4:5, 0:1]  # (B*N, 1)

    # softmax over the bag dimension, per batch element (fp32)
    f = f2.reshape(Bb, Nn)                                                     # (B, N)
    f = f - jnp.max(f, axis=-1, keepdims=True)
    p = jnp.exp(f)
    w = p * pl.reciprocal(jnp.sum(p, axis=-1, keepdims=True), approx=True)     # (B, N)

    # z_b = sum_n w_bn * hm_bn  (batched (1,N)@(N,HID) on the MXU)
    hm3 = hm.reshape(Bb, Nn, HID)
    z3 = jnp.einsum('bqn,bnh->bqh', w[:, None, :].astype(bf16), hm3.astype(bf16),
                    preferred_element_type=f32)                                # (B, 1, HID)
    z = z3.reshape(Bb, HID)

    # Classifier: Linear(HID, 1)
    y = jnp.sum(z * head[3:4, :HID], axis=-1, keepdims=True) + head[4:5, 1:2]  # (B, 1)

    # lane-dense output slab: broadcast the scalar logit across 128 lanes
    out_ref[...] = jnp.broadcast_to(y, out_ref.shape)


def patch_gcn_forward(X, adj, params):
    """X: (B, N, D) f32, adj: (B, N, N) f32 -> Y_pred: (B,) f32."""
    Bb, Nn, Dd = X.shape
    assert Dd == HID

    # ---- pack the 12 small parameter arrays into 5 kernel inputs ----
    gcn_w = params["gcn_w"]                                                   # (L, HID, HID)
    gcn_ln = jnp.stack([params["gcn_b"], params["gcn_g"], params["gcn_beta"]],
                       axis=1)                                                # (L, 3, HID)
    # mlp_w rows are ordered [X | H1 | H2 | H3 | H4] -> (L+1, HID, HID) segments
    mlp_w = params["mlp_w"].reshape(L + 1, HID, HID)
    att_w1 = params["att_w1"]                                                 # (HID, ATT)

    head = jnp.zeros((8, 128), jnp.float32)
    head = head.at[0, :HID].set(params["mlp_b"])          # MLP bias
    head = head.at[1, :ATT].set(params["att_b1"])         # attention fc1 bias
    head = head.at[2, :ATT].set(params["att_w2"][:, 0])   # attention fc2 weight (row form)
    head = head.at[3, :HID].set(params["cls_w"][:, 0])    # classifier weight (row form)
    head = head.at[4, 0].set(params["att_b2"][0])         # attention fc2 bias
    head = head.at[4, 1].set(params["cls_b"][0])          # classifier bias

    # Single kernel invocation (no grid): every operand is a full-array block
    # auto-placed in VMEM; everything here fits trivially on v5e/v6e/v7x.
    out = pl.pallas_call(
        _patch_gcn_kernel,
        out_shape=jax.ShapeDtypeStruct((Bb, 128), jnp.float32),
    )(X, adj, gcn_w, gcn_ln, mlp_w, att_w1, head)
    return out[:, 0]


def make_params(key):
    ks = jax.random.split(key, 12)
    scale = 0.1
    return {
        # stacked GCN weights (layer 0 consumes D == HID, layers 1..L-1 consume HID)
        "gcn_w": scale * jax.random.normal(ks[0], (L, HID, HID), jnp.float32),
        "gcn_b": scale * jax.random.normal(ks[1], (L, HID), jnp.float32),
        "gcn_g": 1.0 + scale * jax.random.normal(ks[2], (L, HID), jnp.float32),   # LN gamma
        "gcn_beta": scale * jax.random.normal(ks[3], (L, HID), jnp.float32),      # LN beta
        "mlp_w": scale * jax.random.normal(ks[4], (D + L * HID, HID), jnp.float32),
        "mlp_b": scale * jax.random.normal(ks[5], (HID,), jnp.float32),
        "att_w1": scale * jax.random.normal(ks[6], (HID, ATT), jnp.float32),
        "att_b1": scale * jax.random.normal(ks[7], (ATT,), jnp.float32),
        "att_w2": scale * jax.random.normal(ks[8], (ATT, 1), jnp.float32),
        "att_b2": scale * jax.random.normal(ks[9], (1,), jnp.float32),
        "cls_w": scale * jax.random.normal(ks[10], (HID, 1), jnp.float32),
        "cls_b": scale * jax.random.normal(ks[11], (1,), jnp.float32),
    }


def patch_gcn_reference(X, adj, params):
    """Pure-JAX fp32 (HIGHEST precision) reference mirroring the torch module."""
    dot = functools.partial(jnp.dot, precision=jax.lax.Precision.HIGHEST)

    def one(x, a):
        feats = [x]
        h = x
        for l in range(L):
            msg = dot(a, h) + h
            hl = dot(msg, params["gcn_w"][l]) + params["gcn_b"][l]
            mu = jnp.mean(hl, axis=-1, keepdims=True)
            var = jnp.mean((hl - mu) ** 2, axis=-1, keepdims=True)
            hl = (hl - mu) / jnp.sqrt(var + LN_EPS)
            hl = hl * params["gcn_g"][l] + params["gcn_beta"][l]
            h = jnp.maximum(hl, 0.0)
            feats.append(h)
        xc = jnp.concatenate(feats, axis=-1)
        hm = jnp.maximum(dot(xc, params["mlp_w"]) + params["mlp_b"], 0.0)
        s = jnp.tanh(dot(hm, params["att_w1"]) + params["att_b1"])
        f = dot(s, params["att_w2"]) + params["att_b2"]
        w = jax.nn.softmax(f, axis=0)
        z = jnp.sum(w * hm, axis=0, keepdims=True)
        y = dot(z, params["cls_w"]) + params["cls_b"]
        return y[0, 0]

    return jax.vmap(one)(X, adj)


if __name__ == "__main__":
    key = jax.random.PRNGKey(0)
    k_x, k_a, k_p = jax.random.split(key, 3)

    X = jax.random.normal(k_x, (B, N, D), jnp.float32)
    # symmetric, roughly row-normalized adjacency
    A_raw = (jax.random.uniform(k_a, (B, N, N)) > 0.7).astype(jnp.float32)
    A_sym = jnp.clip(A_raw + jnp.swapaxes(A_raw, 1, 2), 0.0, 1.0)
    deg = jnp.sum(A_sym, axis=-1, keepdims=True) + 1.0
    adj = A_sym / deg

    params = make_params(k_p)

    fwd = jax.jit(patch_gcn_forward)
    y = jax.block_until_ready(fwd(X, adj, params))

    y_ref = jax.block_until_ready(patch_gcn_reference(X, adj, params))
    assert y.shape == (B,)
    # Kernel uses bf16 MXU operands with fp32 accumulation; compared against a
    # strict fp32 reference, so use a bf16-appropriate tolerance.
    assert np.allclose(np.asarray(y), np.asarray(y_ref), atol=2e-2, rtol=2e-2), (y, y_ref)

    print("KERNEL_OK")
</pallas_src>

<mosaic_0001>
module attributes {stable_mosaic.version = 11 : i64} {
  func.func @_patch_gcn_kernel(%arg0: memref<2x16x32xf32, #tpu.memory_space<vmem>>, %arg1: memref<2x16x16xf32, #tpu.memory_space<vmem>>, %arg2: memref<4x32x32xf32, #tpu.memory_space<vmem>>, %arg3: memref<4x3x32xf32, #tpu.memory_space<vmem>>, %arg4: memref<5x32x32xf32, #tpu.memory_space<vmem>>, %arg5: memref<32x64xf32, #tpu.memory_space<vmem>>, %arg6: memref<8x128xf32, #tpu.memory_space<vmem>>, %arg7: memref<2x128xf32, #tpu.memory_space<vmem>>) attributes {dimension_semantics = [], scalar_prefetch = 0 : i64, scratch_operands = 0 : i64, tpu.core_type = #tpu.core_type<tc>} {
    %c0 = arith.constant 0 : index
    %c0_0 = arith.constant 0 : index
    %c0_1 = arith.constant 0 : index
    %0 = vector.load %arg0[%c0, %c0_0, %c0_1] : memref<2x16x32xf32, #tpu.memory_space<vmem>>, vector<2x16x32xf32>
    %c0_2 = arith.constant 0 : index
    %c0_3 = arith.constant 0 : index
    %c0_4 = arith.constant 0 : index
    %1 = vector.load %arg1[%c0_2, %c0_3, %c0_4] : memref<2x16x16xf32, #tpu.memory_space<vmem>>, vector<2x16x16xf32>
    %2 = arith.truncf %1 : vector<2x16x16xf32> to vector<2x16x16xbf16>
    %c0_5 = arith.constant 0 : index
    %c0_6 = arith.constant 0 : index
    %3 = vector.load %arg6[%c0_5, %c0_6] : memref<8x128xf32, #tpu.memory_space<vmem>>, vector<8x128xf32>
    %4 = vector.shape_cast %0 : vector<2x16x32xf32> to vector<32x32xf32>
    %5 = arith.truncf %4 : vector<32x32xf32> to vector<32x32xbf16>
    %c0_7 = arith.constant 0 : index
    %c0_8 = arith.constant 0 : index
    %c0_9 = arith.constant 0 : index
    %6 = vector.load %arg4[%c0_7, %c0_8, %c0_9] : memref<5x32x32xf32, #tpu.memory_space<vmem>>, vector<1x32x32xf32>
    %7 = vector.shape_cast %6 : vector<1x32x32xf32> to vector<32x32xf32>
    %8 = arith.truncf %7 : vector<32x32xf32> to vector<32x32xbf16>
    %cst = arith.constant dense<0.000000e+00> : vector<32x32xf32>
    %9 = tpu.matmul %5, %8, %cst {dimension_numbers = #tpu.dot_dimension_numbers<[1], [0], [0], [1], [0, 0, 1, 1], [], []>} : vector<32x32xbf16>, vector<32x32xbf16>, vector<32x32xf32> -> vector<32x32xf32>
    %10 = vector.shape_cast %4 : vector<32x32xf32> to vector<2x16x32xf32>
    %11 = arith.truncf %10 : vector<2x16x32xf32> to vector<2x16x32xbf16>
    "tpu.trace_start"() <{level = 10 : i32, message = "bij,bjh->bih"}> : () -> ()
    %cst_10 = arith.constant dense<0.000000e+00> : vector<2x16x32xf32>
    %12 = tpu.matmul %2, %11, %cst_10 {dimension_numbers = #tpu.dot_dimension_numbers<[2], [1], [1], [2], [0, 0, 0, 1, 1, 2], [0], [0]>} : vector<2x16x16xbf16>, vector<2x16x32xbf16>, vector<2x16x32xf32> -> vector<2x16x32xf32>
    "tpu.trace_stop"() : () -> ()
    %13 = arith.addf %12, %10 : vector<2x16x32xf32>
    %14 = vector.shape_cast %13 : vector<2x16x32xf32> to vector<32x32xf32>
    %c0_11 = arith.constant 0 : index
    %c0_12 = arith.constant 0 : index
    %c0_13 = arith.constant 0 : index
    %15 = vector.load %arg3[%c0_11, %c0_12, %c0_13] : memref<4x3x32xf32, #tpu.memory_space<vmem>>, vector<1x3x32xf32>
    %16 = vector.shape_cast %15 : vector<1x3x32xf32> to vector<3x32xf32>
    %17 = arith.truncf %14 : vector<32x32xf32> to vector<32x32xbf16>
    %c0_14 = arith.constant 0 : index
    %c0_15 = arith.constant 0 : index
    %c0_16 = arith.constant 0 : index
    %18 = vector.load %arg2[%c0_14, %c0_15, %c0_16] : memref<4x32x32xf32, #tpu.memory_space<vmem>>, vector<1x32x32xf32>
    %19 = vector.shape_cast %18 : vector<1x32x32xf32> to vector<32x32xf32>
    %20 = arith.truncf %19 : vector<32x32xf32> to vector<32x32xbf16>
    %cst_17 = arith.constant dense<0.000000e+00> : vector<32x32xf32>
    %21 = tpu.matmul %17, %20, %cst_17 {dimension_numbers = #tpu.dot_dimension_numbers<[1], [0], [0], [1], [0, 0, 1, 1], [], []>} : vector<32x32xbf16>, vector<32x32xbf16>, vector<32x32xf32> -> vector<32x32xf32>
    %22 = vector.extract_strided_slice %16 {offsets = [0, 0], sizes = [1, 32], strides = [1, 1]} : vector<3x32xf32> to vector<1x32xf32>
    %23 = vector.broadcast %22 : vector<1x32xf32> to vector<32x32xf32>
    %24 = arith.addf %21, %23 : vector<32x32xf32>
    %cst_18 = arith.constant dense<0.000000e+00> : vector<32xf32>
    %25 = vector.multi_reduction <add>, %24, %cst_18 [1] : vector<32x32xf32> to vector<32xf32>
    %26 = vector.shape_cast %25 : vector<32xf32> to vector<32x1xf32>
    %cst_19 = arith.constant 3.200000e+01 : f32
    %27 = vector.broadcast %cst_19 : f32 to vector<32x1xf32>
    %28 = arith.divf %26, %27 : vector<32x1xf32>
    %29 = vector.broadcast %28 : vector<32x1xf32> to vector<32x32xf32>
    %30 = arith.subf %24, %29 : vector<32x32xf32>
    %31 = vector.broadcast %28 : vector<32x1xf32> to vector<32x32xf32>
    %32 = arith.subf %24, %31 : vector<32x32xf32>
    %33 = arith.mulf %30, %32 : vector<32x32xf32>
    %cst_20 = arith.constant dense<0.000000e+00> : vector<32xf32>
    %34 = vector.multi_reduction <add>, %33, %cst_20 [1] : vector<32x32xf32> to vector<32xf32>
    %35 = vector.shape_cast %34 : vector<32xf32> to vector<32x1xf32>
    %cst_21 = arith.constant 3.200000e+01 : f32
    %36 = vector.broadcast %cst_21 : f32 to vector<32x1xf32>
    %37 = arith.divf %35, %36 : vector<32x1xf32>
    %38 = vector.broadcast %28 : vector<32x1xf32> to vector<32x32xf32>
    %39 = arith.subf %24, %38 : vector<32x32xf32>
    %cst_22 = arith.constant 9.99999974E-6 : f32
    %40 = vector.broadcast %cst_22 : f32 to vector<32x1xf32>
    %41 = arith.addf %37, %40 : vector<32x1xf32>
    %42 = math.rsqrt %41 : vector<32x1xf32>
    %43 = vector.broadcast %42 : vector<32x1xf32> to vector<32x32xf32>
    %44 = arith.mulf %39, %43 : vector<32x32xf32>
    %45 = vector.extract_strided_slice %16 {offsets = [1, 0], sizes = [1, 32], strides = [1, 1]} : vector<3x32xf32> to vector<1x32xf32>
    %46 = vector.broadcast %45 : vector<1x32xf32> to vector<32x32xf32>
    %47 = arith.mulf %44, %46 : vector<32x32xf32>
    %48 = vector.extract_strided_slice %16 {offsets = [2, 0], sizes = [1, 32], strides = [1, 1]} : vector<3x32xf32> to vector<1x32xf32>
    %49 = vector.broadcast %48 : vector<1x32xf32> to vector<32x32xf32>
    %50 = arith.addf %47, %49 : vector<32x32xf32>
    %cst_23 = arith.constant 0.000000e+00 : f32
    %51 = vector.broadcast %cst_23 : f32 to vector<32x32xf32>
    %52 = arith.maximumf %50, %51 : vector<32x32xf32>
    %53 = arith.truncf %52 : vector<32x32xf32> to vector<32x32xbf16>
    %c1 = arith.constant 1 : index
    %c0_24 = arith.constant 0 : index
    %c0_25 = arith.constant 0 : index
    %54 = vector.load %arg4[%c1, %c0_24, %c0_25] : memref<5x32x32xf32, #tpu.memory_space<vmem>>, vector<1x32x32xf32>
    %55 = vector.shape_cast %54 : vector<1x32x32xf32> to vector<32x32xf32>
    %56 = arith.truncf %55 : vector<32x32xf32> to vector<32x32xbf16>
    %cst_26 = arith.constant dense<0.000000e+00> : vector<32x32xf32>
    %57 = tpu.matmul %53, %56, %cst_26 {dimension_numbers = #tpu.dot_dimension_numbers<[1], [0], [0], [1], [0, 0, 1, 1], [], []>} : vector<32x32xbf16>, vector<32x32xbf16>, vector<32x32xf32> -> vector<32x32xf32>
    %58 = arith.addf %9, %57 : vector<32x32xf32>
    %59 = vector.shape_cast %52 : vector<32x32xf32> to vector<2x16x32xf32>
    %60 = arith.truncf %59 : vector<2x16x32xf32> to vector<2x16x32xbf16>
    "tpu.trace_start"() <{level = 10 : i32, message = "bij,bjh->bih"}> : () -> ()
    %cst_27 = arith.constant dense<0.000000e+00> : vector<2x16x32xf32>
    %61 = tpu.matmul %2, %60, %cst_27 {dimension_numbers = #tpu.dot_dimension_numbers<[2], [1], [1], [2], [0, 0, 0, 1, 1, 2], [0], [0]>} : vector<2x16x16xbf16>, vector<2x16x32xbf16>, vector<2x16x32xf32> -> vector<2x16x32xf32>
    "tpu.trace_stop"() : () -> ()
    %62 = arith.addf %61, %59 : vector<2x16x32xf32>
    %63 = vector.shape_cast %62 : vector<2x16x32xf32> to vector<32x32xf32>
    %c1_28 = arith.constant 1 : index
    %c0_29 = arith.constant 0 : index
    %c0_30 = arith.constant 0 : index
    %64 = vector.load %arg3[%c1_28, %c0_29, %c0_30] : memref<4x3x32xf32, #tpu.memory_space<vmem>>, vector<1x3x32xf32>
    %65 = vector.shape_cast %64 : vector<1x3x32xf32> to vector<3x32xf32>
    %66 = arith.truncf %63 : vector<32x32xf32> to vector<32x32xbf16>
    %c1_31 = arith.constant 1 : index
    %c0_32 = arith.constant 0 : index
    %c0_33 = arith.constant 0 : index
    %67 = vector.load %arg2[%c1_31, %c0_32, %c0_33] : memref<4x32x32xf32, #tpu.memory_space<vmem>>, vector<1x32x32xf32>
    %68 = vector.shape_cast %67 : vector<1x32x32xf32> to vector<32x32xf32>
    %69 = arith.truncf %68 : vector<32x32xf32> to vector<32x32xbf16>
    %cst_34 = arith.constant dense<0.000000e+00> : vector<32x32xf32>
    %70 = tpu.matmul %66, %69, %cst_34 {dimension_numbers = #tpu.dot_dimension_numbers<[1], [0], [0], [1], [0, 0, 1, 1], [], []>} : vector<32x32xbf16>, vector<32x32xbf16>, vector<32x32xf32> -> vector<32x32xf32>
    %71 = vector.extract_strided_slice %65 {offsets = [0, 0], sizes = [1, 32], strides = [1, 1]} : vector<3x32xf32> to vector<1x32xf32>
    %72 = vector.broadcast %71 : vector<1x32xf32> to vector<32x32xf32>
    %73 = arith.addf %70, %72 : vector<32x32xf32>
    %cst_35 = arith.constant dense<0.000000e+00> : vector<32xf32>
    %74 = vector.multi_reduction <add>, %73, %cst_35 [1] : vector<32x32xf32> to vector<32xf32>
    %75 = vector.shape_cast %74 : vector<32xf32> to vector<32x1xf32>
    %cst_36 = arith.constant 3.200000e+01 : f32
    %76 = vector.broadcast %cst_36 : f32 to vector<32x1xf32>
    %77 = arith.divf %75, %76 : vector<32x1xf32>
    %78 = vector.broadcast %77 : vector<32x1xf32> to vector<32x32xf32>
    %79 = arith.subf %73, %78 : vector<32x32xf32>
    %80 = vector.broadcast %77 : vector<32x1xf32> to vector<32x32xf32>
    %81 = arith.subf %73, %80 : vector<32x32xf32>
    %82 = arith.mulf %79, %81 : vector<32x32xf32>
    %cst_37 = arith.constant dense<0.000000e+00> : vector<32xf32>
    %83 = vector.multi_reduction <add>, %82, %cst_37 [1] : vector<32x32xf32> to vector<32xf32>
    %84 = vector.shape_cast %83 : vector<32xf32> to vector<32x1xf32>
    %cst_38 = arith.constant 3.200000e+01 : f32
    %85 = vector.broadcast %cst_38 : f32 to vector<32x1xf32>
    %86 = arith.divf %84, %85 : vector<32x1xf32>
    %87 = vector.broadcast %77 : vector<32x1xf32> to vector<32x32xf32>
    %88 = arith.subf %73, %87 : vector<32x32xf32>
    %cst_39 = arith.constant 9.99999974E-6 : f32
    %89 = vector.broadcast %cst_39 : f32 to vector<32x1xf32>
    %90 = arith.addf %86, %89 : vector<32x1xf32>
    %91 = math.rsqrt %90 : vector<32x1xf32>
    %92 = vector.broadcast %91 : vector<32x1xf32> to vector<32x32xf32>
    %93 = arith.mulf %88, %92 : vector<32x32xf32>
    %94 = vector.extract_strided_slice %65 {offsets = [1, 0], sizes = [1, 32], strides = [1, 1]} : vector<3x32xf32> to vector<1x32xf32>
    %95 = vector.broadcast %94 : vector<1x32xf32> to vector<32x32xf32>
    %96 = arith.mulf %93, %95 : vector<32x32xf32>
    %97 = vector.extract_strided_slice %65 {offsets = [2, 0], sizes = [1, 32], strides = [1, 1]} : vector<3x32xf32> to vector<1x32xf32>
    %98 = vector.broadcast %97 : vector<1x32xf32> to vector<32x32xf32>
    %99 = arith.addf %96, %98 : vector<32x32xf32>
    %cst_40 = arith.constant 0.000000e+00 : f32
    %100 = vector.broadcast %cst_40 : f32 to vector<32x32xf32>
    %101 = arith.maximumf %99, %100 : vector<32x32xf32>
    %102 = arith.truncf %101 : vector<32x32xf32> to vector<32x32xbf16>
    %c2 = arith.constant 2 : index
    %c0_41 = arith.constant 0 : index
    %c0_42 = arith.constant 0 : index
    %103 = vector.load %arg4[%c2, %c0_41, %c0_42] : memref<5x32x32xf32, #tpu.memory_space<vmem>>, vector<1x32x32xf32>
    %104 = vector.shape_cast %103 : vector<1x32x32xf32> to vector<32x32xf32>
    %105 = arith.truncf %104 : vector<32x32xf32> to vector<32x32xbf16>
    %cst_43 = arith.constant dense<0.000000e+00> : vector<32x32xf32>
    %106 = tpu.matmul %102, %105, %cst_43 {dimension_numbers = #tpu.dot_dimension_numbers<[1], [0], [0], [1], [0, 0, 1, 1], [], []>} : vector<32x32xbf16>, vector<32x32xbf16>, vector<32x32xf32> -> vector<32x32xf32>
    %107 = arith.addf %58, %106 : vector<32x32xf32>
    %108 = vector.shape_cast %101 : vector<32x32xf32> to vector<2x16x32xf32>
    %109 = arith.truncf %108 : vector<2x16x32xf32> to vector<2x16x32xbf16>
    "tpu.trace_start"() <{level = 10 : i32, message = "bij,bjh->bih"}> : () -> ()
    %cst_44 = arith.constant dense<0.000000e+00> : vector<2x16x32xf32>
    %110 = tpu.matmul %2, %109, %cst_44 {dimension_numbers = #tpu.dot_dimension_numbers<[2], [1], [1], [2], [0, 0, 0, 1, 1, 2], [0], [0]>} : vector<2x16x16xbf16>, vector<2x16x32xbf16>, vector<2x16x32xf32> -> vector<2x16x32xf32>
    "tpu.trace_stop"() : () -> ()
    %111 = arith.addf %110, %108 : vector<2x16x32xf32>
    %112 = vector.shape_cast %111 : vector<2x16x32xf32> to vector<32x32xf32>
    %c2_45 = arith.constant 2 : index
    %c0_46 = arith.constant 0 : index
    %c0_47 = arith.constant 0 : index
    %113 = vector.load %arg3[%c2_45, %c0_46, %c0_47] : memref<4x3x32xf32, #tpu.memory_space<vmem>>, vector<1x3x32xf32>
    %114 = vector.shape_cast %113 : vector<1x3x32xf32> to vector<3x32xf32>
    %115 = arith.truncf %112 : vector<32x32xf32> to vector<32x32xbf16>
    %c2_48 = arith.constant 2 : index
    %c0_49 = arith.constant 0 : index
    %c0_50 = arith.constant 0 : index
    %116 = vector.load %arg2[%c2_48, %c0_49, %c0_50] : memref<4x32x32xf32, #tpu.memory_space<vmem>>, vector<1x32x32xf32>
    %117 = vector.shape_cast %116 : vector<1x32x32xf32> to vector<32x32xf32>
    %118 = arith.truncf %117 : vector<32x32xf32> to vector<32x32xbf16>
    %cst_51 = arith.constant dense<0.000000e+00> : vector<32x32xf32>
    %119 = tpu.matmul %115, %118, %cst_51 {dimension_numbers = #tpu.dot_dimension_numbers<[1], [0], [0], [1], [0, 0, 1, 1], [], []>} : vector<32x32xbf16>, vector<32x32xbf16>, vector<32x32xf32> -> vector<32x32xf32>
    %120 = vector.extract_strided_slice %114 {offsets = [0, 0], sizes = [1, 32], strides = [1, 1]} : vector<3x32xf32> to vector<1x32xf32>
    %121 = vector.broadcast %120 : vector<1x32xf32> to vector<32x32xf32>
    %122 = arith.addf %119, %121 : vector<32x32xf32>
    %cst_52 = arith.constant dense<0.000000e+00> : vector<32xf32>
    %123 = vector.multi_reduction <add>, %122, %cst_52 [1] : vector<32x32xf32> to vector<32xf32>
    %124 = vector.shape_cast %123 : vector<32xf32> to vector<32x1xf32>
    %cst_53 = arith.constant 3.200000e+01 : f32
    %125 = vector.broadcast %cst_53 : f32 to vector<32x1xf32>
    %126 = arith.divf %124, %125 : vector<32x1xf32>
    %127 = vector.broadcast %126 : vector<32x1xf32> to vector<32x32xf32>
    %128 = arith.subf %122, %127 : vector<32x32xf32>
    %129 = vector.broadcast %126 : vector<32x1xf32> to vector<32x32xf32>
    %130 = arith.subf %122, %129 : vector<32x32xf32>
    %131 = arith.mulf %128, %130 : vector<32x32xf32>
    %cst_54 = arith.constant dense<0.000000e+00> : vector<32xf32>
    %132 = vector.multi_reduction <add>, %131, %cst_54 [1] : vector<32x32xf32> to vector<32xf32>
    %133 = vector.shape_cast %132 : vector<32xf32> to vector<32x1xf32>
    %cst_55 = arith.constant 3.200000e+01 : f32
    %134 = vector.broadcast %cst_55 : f32 to vector<32x1xf32>
    %135 = arith.divf %133, %134 : vector<32x1xf32>
    %136 = vector.broadcast %126 : vector<32x1xf32> to vector<32x32xf32>
    %137 = arith.subf %122, %136 : vector<32x32xf32>
    %cst_56 = arith.constant 9.99999974E-6 : f32
    %138 = vector.broadcast %cst_56 : f32 to vector<32x1xf32>
    %139 = arith.addf %135, %138 : vector<32x1xf32>
    %140 = math.rsqrt %139 : vector<32x1xf32>
    %141 = vector.broadcast %140 : vector<32x1xf32> to vector<32x32xf32>
    %142 = arith.mulf %137, %141 : vector<32x32xf32>
    %143 = vector.extract_strided_slice %114 {offsets = [1, 0], sizes = [1, 32], strides = [1, 1]} : vector<3x32xf32> to vector<1x32xf32>
    %144 = vector.broadcast %143 : vector<1x32xf32> to vector<32x32xf32>
    %145 = arith.mulf %142, %144 : vector<32x32xf32>
    %146 = vector.extract_strided_slice %114 {offsets = [2, 0], sizes = [1, 32], strides = [1, 1]} : vector<3x32xf32> to vector<1x32xf32>
    %147 = vector.broadcast %146 : vector<1x32xf32> to vector<32x32xf32>
    %148 = arith.addf %145, %147 : vector<32x32xf32>
    %cst_57 = arith.constant 0.000000e+00 : f32
    %149 = vector.broadcast %cst_57 : f32 to vector<32x32xf32>
    %150 = arith.maximumf %148, %149 : vector<32x32xf32>
    %151 = arith.truncf %150 : vector<32x32xf32> to vector<32x32xbf16>
    %c3 = arith.constant 3 : index
    %c0_58 = arith.constant 0 : index
    %c0_59 = arith.constant 0 : index
    %152 = vector.load %arg4[%c3, %c0_58, %c0_59] : memref<5x32x32xf32, #tpu.memory_space<vmem>>, vector<1x32x32xf32>
    %153 = vector.shape_cast %152 : vector<1x32x32xf32> to vector<32x32xf32>
    %154 = arith.truncf %153 : vector<32x32xf32> to vector<32x32xbf16>
    %cst_60 = arith.constant dense<0.000000e+00> : vector<32x32xf32>
    %155 = tpu.matmul %151, %154, %cst_60 {dimension_numbers = #tpu.dot_dimension_numbers<[1], [0], [0], [1], [0, 0, 1, 1], [], []>} : vector<32x32xbf16>, vector<32x32xbf16>, vector<32x32xf32> -> vector<32x32xf32>
    %156 = arith.addf %107, %155 : vector<32x32xf32>
    %157 = vector.shape_cast %150 : vector<32x32xf32> to vector<2x16x32xf32>
    %158 = arith.truncf %157 : vector<2x16x32xf32> to vector<2x16x32xbf16>
    "tpu.trace_start"() <{level = 10 : i32, message = "bij,bjh->bih"}> : () -> ()
    %cst_61 = arith.constant dense<0.000000e+00> : vector<2x16x32xf32>
    %159 = tpu.matmul %2, %158, %cst_61 {dimension_numbers = #tpu.dot_dimension_numbers<[2], [1], [1], [2], [0, 0, 0, 1, 1, 2], [0], [0]>} : vector<2x16x16xbf16>, vector<2x16x32xbf16>, vector<2x16x32xf32> -> vector<2x16x32xf32>
    "tpu.trace_stop"() : () -> ()
    %160 = arith.addf %159, %157 : vector<2x16x32xf32>
    %161 = vector.shape_cast %160 : vector<2x16x32xf32> to vector<32x32xf32>
    %c3_62 = arith.constant 3 : index
    %c0_63 = arith.constant 0 : index
    %c0_64 = arith.constant 0 : index
    %162 = vector.load %arg3[%c3_62, %c0_63, %c0_64] : memref<4x3x32xf32, #tpu.memory_space<vmem>>, vector<1x3x32xf32>
    %163 = vector.shape_cast %162 : vector<1x3x32xf32> to vector<3x32xf32>
    %164 = arith.truncf %161 : vector<32x32xf32> to vector<32x32xbf16>
    %c3_65 = arith.constant 3 : index
    %c0_66 = arith.constant 0 : index
    %c0_67 = arith.constant 0 : index
    %165 = vector.load %arg2[%c3_65, %c0_66, %c0_67] : memref<4x32x32xf32, #tpu.memory_space<vmem>>, vector<1x32x32xf32>
    %166 = vector.shape_cast %165 : vector<1x32x32xf32> to vector<32x32xf32>
    %167 = arith.truncf %166 : vector<32x32xf32> to vector<32x32xbf16>
    %cst_68 = arith.constant dense<0.000000e+00> : vector<32x32xf32>
    %168 = tpu.matmul %164, %167, %cst_68 {dimension_numbers = #tpu.dot_dimension_numbers<[1], [0], [0], [1], [0, 0, 1, 1], [], []>} : vector<32x32xbf16>, vector<32x32xbf16>, vector<32x32xf32> -> vector<32x32xf32>
    %169 = vector.extract_strided_slice %163 {offsets = [0, 0], sizes = [1, 32], strides = [1, 1]} : vector<3x32xf32> to vector<1x32xf32>
    %170 = vector.broadcast %169 : vector<1x32xf32> to vector<32x32xf32>
    %171 = arith.addf %168, %170 : vector<32x32xf32>
    %cst_69 = arith.constant dense<0.000000e+00> : vector<32xf32>
    %172 = vector.multi_reduction <add>, %171, %cst_69 [1] : vector<32x32xf32> to vector<32xf32>
    %173 = vector.shape_cast %172 : vector<32xf32> to vector<32x1xf32>
    %cst_70 = arith.constant 3.200000e+01 : f32
    %174 = vector.broadcast %cst_70 : f32 to vector<32x1xf32>
    %175 = arith.divf %173, %174 : vector<32x1xf32>
    %176 = vector.broadcast %175 : vector<32x1xf32> to vector<32x32xf32>
    %177 = arith.subf %171, %176 : vector<32x32xf32>
    %178 = vector.broadcast %175 : vector<32x1xf32> to vector<32x32xf32>
    %179 = arith.subf %171, %178 : vector<32x32xf32>
    %180 = arith.mulf %177, %179 : vector<32x32xf32>
    %cst_71 = arith.constant dense<0.000000e+00> : vector<32xf32>
    %181 = vector.multi_reduction <add>, %180, %cst_71 [1] : vector<32x32xf32> to vector<32xf32>
    %182 = vector.shape_cast %181 : vector<32xf32> to vector<32x1xf32>
    %cst_72 = arith.constant 3.200000e+01 : f32
    %183 = vector.broadcast %cst_72 : f32 to vector<32x1xf32>
    %184 = arith.divf %182, %183 : vector<32x1xf32>
    %185 = vector.broadcast %175 : vector<32x1xf32> to vector<32x32xf32>
    %186 = arith.subf %171, %185 : vector<32x32xf32>
    %cst_73 = arith.constant 9.99999974E-6 : f32
    %187 = vector.broadcast %cst_73 : f32 to vector<32x1xf32>
    %188 = arith.addf %184, %187 : vector<32x1xf32>
    %189 = math.rsqrt %188 : vector<32x1xf32>
    %190 = vector.broadcast %189 : vector<32x1xf32> to vector<32x32xf32>
    %191 = arith.mulf %186, %190 : vector<32x32xf32>
    %192 = vector.extract_strided_slice %163 {offsets = [1, 0], sizes = [1, 32], strides = [1, 1]} : vector<3x32xf32> to vector<1x32xf32>
    %193 = vector.broadcast %192 : vector<1x32xf32> to vector<32x32xf32>
    %194 = arith.mulf %191, %193 : vector<32x32xf32>
    %195 = vector.extract_strided_slice %163 {offsets = [2, 0], sizes = [1, 32], strides = [1, 1]} : vector<3x32xf32> to vector<1x32xf32>
    %196 = vector.broadcast %195 : vector<1x32xf32> to vector<32x32xf32>
    %197 = arith.addf %194, %196 : vector<32x32xf32>
    %cst_74 = arith.constant 0.000000e+00 : f32
    %198 = vector.broadcast %cst_74 : f32 to vector<32x32xf32>
    %199 = arith.maximumf %197, %198 : vector<32x32xf32>
    %200 = arith.truncf %199 : vector<32x32xf32> to vector<32x32xbf16>
    %c4 = arith.constant 4 : index
    %c0_75 = arith.constant 0 : index
    %c0_76 = arith.constant 0 : index
    %201 = vector.load %arg4[%c4, %c0_75, %c0_76] : memref<5x32x32xf32, #tpu.memory_space<vmem>>, vector<1x32x32xf32>
    %202 = vector.shape_cast %201 : vector<1x32x32xf32> to vector<32x32xf32>
    %203 = arith.truncf %202 : vector<32x32xf32> to vector<32x32xbf16>
    %cst_77 = arith.constant dense<0.000000e+00> : vector<32x32xf32>
    %204 = tpu.matmul %200, %203, %cst_77 {dimension_numbers = #tpu.dot_dimension_numbers<[1], [0], [0], [1], [0, 0, 1, 1], [], []>} : vector<32x32xbf16>, vector<32x32xbf16>, vector<32x32xf32> -> vector<32x32xf32>
    %205 = arith.addf %156, %204 : vector<32x32xf32>
    %206 = vector.extract_strided_slice %3 {offsets = [0, 0], sizes = [1, 32], strides = [1, 1]} : vector<8x128xf32> to vector<1x32xf32>
    %207 = vector.broadcast %206 : vector<1x32xf32> to vector<32x32xf32>
    %208 = arith.addf %205, %207 : vector<32x32xf32>
    %cst_78 = arith.constant 0.000000e+00 : f32
    %209 = vector.broadcast %cst_78 : f32 to vector<32x32xf32>
    %210 = arith.maximumf %208, %209 : vector<32x32xf32>
    %211 = arith.truncf %210 : vector<32x32xf32> to vector<32x32xbf16>
    %c0_79 = arith.constant 0 : index
    %c0_80 = arith.constant 0 : index
    %212 = vector.load %arg5[%c0_79, %c0_80] : memref<32x64xf32, #tpu.memory_space<vmem>>, vector<32x64xf32>
    %213 = arith.truncf %212 : vector<32x64xf32> to vector<32x64xbf16>
    %cst_81 = arith.constant dense<0.000000e+00> : vector<32x64xf32>
    %214 = tpu.matmul %211, %213, %cst_81 {dimension_numbers = #tpu.dot_dimension_numbers<[1], [0], [0], [1], [0, 0, 1, 1], [], []>} : vector<32x32xbf16>, vector<32x64xbf16>, vector<32x64xf32> -> vector<32x64xf32>
    %215 = vector.extract_strided_slice %3 {offsets = [1, 0], sizes = [1, 64], strides = [1, 1]} : vector<8x128xf32> to vector<1x64xf32>
    %216 = vector.broadcast %215 : vector<1x64xf32> to vector<32x64xf32>
    %217 = arith.addf %214, %216 : vector<32x64xf32>
    %218 = math.tanh %217 : vector<32x64xf32>
    %219 = vector.extract_strided_slice %3 {offsets = [2, 0], sizes = [1, 64], strides = [1, 1]} : vector<8x128xf32> to vector<1x64xf32>
    %220 = vector.broadcast %219 : vector<1x64xf32> to vector<32x64xf32>
    %221 = arith.mulf %218, %220 : vector<32x64xf32>
    %cst_82 = arith.constant dense<0.000000e+00> : vector<32xf32>
    %222 = vector.multi_reduction <add>, %221, %cst_82 [1] : vector<32x64xf32> to vector<32xf32>
    %223 = vector.shape_cast %222 : vector<32xf32> to vector<32x1xf32>
    %224 = vector.extract_strided_slice %3 {offsets = [4, 0], sizes = [1, 1], strides = [1, 1]} : vector<8x128xf32> to vector<1x1xf32>
    %225 = vector.broadcast %224 : vector<1x1xf32> to vector<32x1xf32>
    %226 = arith.addf %223, %225 : vector<32x1xf32>
    %227 = vector.shape_cast %226 : vector<32x1xf32> to vector<2x16xf32>
    %cst_83 = arith.constant dense<0xFF800000> : vector<2xf32>
    %228 = vector.multi_reduction <maximumf>, %227, %cst_83 [1] : vector<2x16xf32> to vector<2xf32>
    %229 = vector.shape_cast %228 : vector<2xf32> to vector<2x1xf32>
    %230 = vector.broadcast %229 : vector<2x1xf32> to vector<2x16xf32>
    %231 = arith.subf %227, %230 : vector<2x16xf32>
    %232 = math.exp %231 : vector<2x16xf32>
    %cst_84 = arith.constant dense<0.000000e+00> : vector<2xf32>
    %233 = vector.multi_reduction <add>, %232, %cst_84 [1] : vector<2x16xf32> to vector<2xf32>
    %234 = vector.shape_cast %233 : vector<2xf32> to vector<2x1xf32>
    %235 = tpu.reciprocal %234 {approx = true} : vector<2x1xf32> -> vector<2x1xf32>
    %236 = vector.broadcast %235 : vector<2x1xf32> to vector<2x16xf32>
    %237 = arith.mulf %232, %236 : vector<2x16xf32>
    %238 = vector.shape_cast %210 : vector<32x32xf32> to vector<2x16x32xf32>
    %239 = vector.shape_cast %237 : vector<2x16xf32> to vector<2x1x16xf32>
    %240 = arith.truncf %239 : vector<2x1x16xf32> to vector<2x1x16xbf16>
    %241 = arith.truncf %238 : vector<2x16x32xf32> to vector<2x16x32xbf16>
    "tpu.trace_start"() <{level = 10 : i32, message = "bqn,bnh->bqh"}> : () -> ()
    %cst_85 = arith.constant dense<0.000000e+00> : vector<2x1x32xf32>
    %242 = tpu.matmul %240, %241, %cst_85 {dimension_numbers = #tpu.dot_dimension_numbers<[2], [1], [1], [2], [0, 0, 0, 1, 1, 2], [0], [0]>} : vector<2x1x16xbf16>, vector<2x16x32xbf16>, vector<2x1x32xf32> -> vector<2x1x32xf32>
    "tpu.trace_stop"() : () -> ()
    %243 = vector.shape_cast %242 : vector<2x1x32xf32> to vector<2x32xf32>
    %244 = vector.extract_strided_slice %3 {offsets = [3, 0], sizes = [1, 32], strides = [1, 1]} : vector<8x128xf32> to vector<1x32xf32>
    %245 = vector.broadcast %244 : vector<1x32xf32> to vector<2x32xf32>
    %246 = arith.mulf %243, %245 : vector<2x32xf32>
    %cst_86 = arith.constant dense<0.000000e+00> : vector<2xf32>
    %247 = vector.multi_reduction <add>, %246, %cst_86 [1] : vector<2x32xf32> to vector<2xf32>
    %248 = vector.shape_cast %247 : vector<2xf32> to vector<2x1xf32>
    %249 = vector.extract_strided_slice %3 {offsets = [4, 1], sizes = [1, 1], strides = [1, 1]} : vector<8x128xf32> to vector<1x1xf32>
    %250 = vector.broadcast %249 : vector<1x1xf32> to vector<2x1xf32>
    %251 = arith.addf %248, %250 : vector<2x1xf32>
    %252 = vector.shape_cast %251 : vector<2x1xf32> to vector<2x1xf32>
    %253 = vector.broadcast %252 : vector<2x1xf32> to vector<2x128xf32>
    %c0_87 = arith.constant 0 : index
    %c0_88 = arith.constant 0 : index
    %254 = vector.load %arg7[%c0_87, %c0_88] : memref<2x128xf32, #tpu.memory_space<vmem>>, vector<2x128xf32>
    tpu.vector_store %arg7[%c0_87, %c0_88], %253 {strides = array<i32>} : memref<2x128xf32, #tpu.memory_space<vmem>>, vector<2x128xf32>,
    return
  }
}

</mosaic_0001>

<bundles_post_ra>
// kernel: patch_gcn_forward.1
= control target key start
LH: loop header
LB: loop body
LE: loop exit
PB: predicated region body
PF: predicated region fallthrough
CT: control target
= control target key end

     0   :  { %v1993_v0 = vmov 0.0   ;;  %vm1994_vm0 = vmmov 0   ;;  %vm46_vm1 = vcmask 130048   ;;  %vm148_vm2 = vcmask 261120   ;;  %s2408_s0 = inlined_call_operand.vmem [shape: f32[2,16,32], index: 0, kind: input, shape index: {}]   ;;  %s2409_s1 = inlined_call_operand.vmem [shape: f32[2,16,16], index: 1, kind: input, shape index: {}]   ;;  %s2410_s2 = inlined_call_operand.vmem [shape: f32[4,32,32], index: 2, kind: input, shape index: {}]   ;;  %s2411_s3 = inlined_call_operand.vmem [shape: f32[4,3,32], index: 3, kind: input, shape index: {}]   ;;  %s2412_s4 = inlined_call_operand.vmem [shape: f32[5,32,32], index: 4, kind: input, shape index: {}]   ;;  %s2413_s5 = inlined_call_operand.vmem [shape: f32[32,64], index: 5, kind: input, shape index: {}]   ;;  %s2414_s6 = inlined_call_operand.vmem [shape: f32[8,128], index: 6, kind: input, shape index: {}]   ;;  %s2415_s7 = inlined_call_operand.vmem [shape: f32[2,128], index: 7, kind: output, shape index: {}]  }
   0x1   :  { %1780 = vmatprep.subr.bf16.mxu0 %v1993_v0  ;;  %1786 = vmatprep.subr.bf16.mxu1 %v1993_v0  ;;  %v27_v1 = vld [vmem:[%s2408_s0] sm:$0xff]  ;;  %v28_v2 = vld [vmem:[%s2408_s0 + $0x8] sm:$0xff]  ;;  %v29_v3 = vld [vmem:[%s2408_s0 + $0x10] sm:$0xff]  ;;  %v144_v33 = vlaneseq  ;;  %vm1363_vm3 = vcmask 523264   ;;  %vm1411_vm4 = vcmask 130112   ;;  %vm1422_vm5 = vcmask 1041409  }
   0x2   :  { %v2048_v4 = vpack.c.bf16 %v28_v2, %v27_v1  ;;  %v30_v5 = vld [vmem:[%s2408_s0 + $0x18] sm:$0xff]  ;;  %1782 = vmatprep.mubr.msk.bf16.mxu0 %vm1994_vm0, %v1993_v0  ;;  %1788 = vmatprep.mubr.msk.bf16.mxu1 %vm1994_vm0, %v1993_v0  ;;  %v31_v6 = vld [vmem:[%s2409_s1] sm:$0xff]  ;;  %v32_v7 = vld [vmem:[%s2409_s1 + $0x8] sm:$0xff]  ;;  %vm1425_vm6 = vcmask 123904   ;;  %vm1644_vm7 = vcmask 254976  }
   0x3   :  { %v2063_v8 = vpack.c.bf16 %v30_v5, %v29_v3  ;;  %v2065_v9 = vpack.c.bf16 %v32_v7, %v31_v6  ;;  %v33_v10 = vld [vmem:[%s2409_s1 + $0x10] sm:$0xff]  ;;  %v34_v11 = vld [vmem:[%s2409_s1 + $0x18] sm:$0xff]  ;;  %v138_v13 = vld [vmem:[%s2410_s2] sm:$0xff]  ;;  %v2099_v34 = vshrl.u32 %v144_v33, 7 }
   0x4   :  { %1781 = vmatpush3.bf16.msra.mxu0 %v2048_v4  ;;  %v2074_v12 = vpack.c.bf16 %v34_v11, %v33_v10  ;;  %v139_v14 = vld [vmem:[%s2410_s2 + $0x8] sm:$0xff]  ;;  %v140_v16 = vld [vmem:[%s2410_s2 + $0x10] sm:$0xff]  ;;  %v141_v17 = vld [vmem:[%s2410_s2 + $0x18] sm:$0xff] }
   0x5   :  { %1787 = vmatpush3.bf16.msra.mxu1 %v2063_v8  ;;  %v142_v15 = vpack.c.bf16 %v139_v14, %v138_v13  ;;  %v143_v18 = vpack.c.bf16 %v141_v17, %v140_v16  ;;  %v2102_v35 = vsub.s32 0, %v2099_v34  ;;  %v2107_v36 = vld [vmem:[%s2411_s3] sm:$0x7]  ;;  %v1664_v11 = vld [vmem:[%s2412_s4 + $0x28] sm:$0xff]  ;;  %v1665_v14 = vld [vmem:[%s2412_s4 + $0x30] sm:$0xff] }
   0x6   :  { %v1663_v10 = vld [vmem:[%s2412_s4 + $0x20] sm:$0xff] }
   0x7   :  { %1783 = vmatmul.mubr.msk.bf16.vlgmr.msra.gmra.mrb[0].mxu0 %vm46_vm1, %v2065_v9  ;;  %1792 = vmatprep.subr.bf16.mxu0 %v142_v15  ;;  %v147_v37 = vrot.slane %v2107_v36, %v2102_v35  ;;  %v284_v13 = vpack.c.bf16 %v1664_v11, %v1663_v10  ;;  %v40_v17 = vld [vmem:[%s2412_s4] sm:$0xff] }
   0x8   :  { %1789 = vmatmul.mubr.msk.bf16.vlgmr.msra.gmra.mrb[0].mxu1 %vm46_vm1, %v2074_v12  ;;  %1793 = vmatpush3.bf16.msra.mxu0 %v142_v15  ;;  %v1666_v15 = vld [vmem:[%s2412_s4 + $0x38] sm:$0xff] }
   0x9   :  { %1794 = vmatprep.subr.bf16.mxu0 %v143_v18  ;;  %1800 = vmatprep.subr.bf16.mxu1 %v284_v13  ;;  %v285_v16 = vpack.c.bf16 %v1666_v15, %v1665_v14 }
   0xa   :  { %1801 = vmatpush3.bf16.msra.mxu1 %v284_v13 }
   0xb   :  { %1802 = vmatprep.subr.bf16.mxu1 %v285_v16 }
   0xc   :  { %1795 = vmatpush3.bf16.msra.mxu0 %v143_v18  ;;  %v41_v18 = vld [vmem:[%s2412_s4 + $0x8] sm:$0xff] }
   0xd   :  { %1816 = vmatprep.subr.bf16.mxu0 %v1993_v0 }
   0xe   :  { %1803 = vmatpush3.bf16.msra.mxu1 %v285_v16 }
  0xda   :  { %v84_v19 = vpop.f32.mrb[0].mxu0 }
  0xdb   :  { %v128_v20 = vpop.f32.mrb[0].mxu1  ;;  %v1784_v21 = vpop.f32.mrb[1].mxu0  ;;  %v85_v25 = vadd.f32 %v84_v19, %v27_v1  ;;  %v44_v19 = vpack.c.bf16 %v41_v18, %v40_v17 }
  0xdc   :  { %v129_v22 = vadd.f32 %v128_v20, %v29_v3  ;;  %v1790_v23 = vpop.f32.mrb[1].mxu1  ;;  %v87_v24 = vpop.f32.mrb[2].mxu0 }
  0xdd   :  { %v88_v26 = vadd.f32 %v87_v24, %v28_v2  ;;  %v131_v27 = vpop.f32.mrb[2].mxu1  ;;  %v1785_v28 = vpop.f32.mrb[3].mxu0  ;;  %1808 = vmatprep.subr.bf16.mxu1 %v44_v19 }
  0xde   :  { %v132_v29 = vadd.f32 %v131_v27, %v30_v5  ;;  %v1791_v30 = vpop.f32.mrb[3].mxu1 }
  0xdf   :  { %v136_v31 = vpack.c.bf16 %v88_v26, %v85_v25 }
  0xe0   :  { %v137_v32 = vpack.c.bf16 %v132_v29, %v129_v22 }
  0xe1   :  { %1796 = vmatprep.mubr.msk.bf16.mxu0 %vm148_vm2, %v136_v31  ;;  %v2138_v31 = vsub.s32 1, %v2099_v34 }
  0xe2   :  { %1797 = vmatmul.mubr.msk.bf16.vlgmr.msra.gmra.mrb[4].mxu0 %vm148_vm2, %v137_v32 }
  0xe3   :  { %1818 = vmatprep.mubr.msk.bf16.mxu0 %vm1994_vm0, %v1993_v0 }
 0x1b5   :  { %v1798_v38 = vpop.f32.mrb[4].mxu0 }
 0x1b6   :  { %v198_v39 = vadd.f32 %v1798_v38, %v147_v37  ;;  %v189_v40 = vpop.f32.mrb[5].mxu0  ;;  %v2143_v38 = vsub.s32 2, %v2099_v34 }
 0x1b7   :  { %v190_v41 = vadd.f32 %v189_v40, %v147_v37  ;;  %v1799_v42 = vpop.f32.mrb[6].mxu0 }
 0x1b8   :  { %v201_v43 = vadd.f32 %v1799_v42, %v147_v37  ;;  %v192_v44 = vpop.f32.mrb[7].mxu0  ;;  %v210_v45 = vsel %vm148_vm2, %v198_v39, 0.0 }
 0x1b9   :  { %v193_v46 = vadd.f32 %v192_v44, %v147_v37  ;;  %211 = vadd.xlane.f32.xlu1 %v210_v45  ;;  %v204_v47 = vsel %vm148_vm2, %v190_v41, 0.0  ;;  %v260_v37 = vrot.slane %v2107_v36, %v2138_v31 }
 0x1ba   :  { %205 = vadd.xlane.f32.xlu0 %v204_v47  ;;  %v213_v48 = vsel %vm148_vm2, %v201_v43, 0.0 }
 0x1bb   :  { %v207_v49 = vsel %vm148_vm2, %v193_v46, 0.0 }
 0x1bd   :  { %214 = vadd.xlane.f32.xlu1 %v213_v48 }
 0x1be   :  { %208 = vadd.xlane.f32.xlu0 %v207_v49 }
 0x246   :  { %v212_v50 = vpop.xlane.xlu1 %211 }
 0x247   :  { %v219_v51 = vmul.f32 0.03125, %v212_v50  ;;  %v206_v52 = vpop.xlane.xlu0 %205 }
 0x248   :  { %v217_v53 = vmul.f32 0.03125, %v206_v52 }
 0x249   :  { %v223_v54 = vsub.f32 %v198_v39, %v219_v51 }
 0x24a   :  { %v221_v55 = vsub.f32 %v190_v41, %v217_v53  ;;  %v215_v56 = vpop.xlane.xlu1 %214  ;;  %v268_v41 = vrot.slane %v2107_v36, %v2143_v38 }
 0x24b   :  { %v220_v57 = vmul.f32 0.03125, %v215_v56  ;;  %v209_v58 = vpop.xlane.xlu0 %208  ;;  %v227_v1 = vmul.f32 %v223_v54, %v223_v54 }
 0x24c   :  { %v218_v59 = vmul.f32 0.03125, %v209_v58  ;;  %v225_v60 = vmul.f32 %v221_v55, %v221_v55 }
 0x24d   :  { %v224_v61 = vsub.f32 %v201_v43, %v220_v57  ;;  %v235_v3 = vsel %vm148_vm2, %v227_v1, 0.0  ;;  %v1675_v1 = vld [vmem:[%s2410_s2 + $0x28] sm:$0xff] }
 0x24e   :  { %v222_v62 = vsub.f32 %v193_v46, %v218_v59  ;;  %v229_v63 = vsel %vm148_vm2, %v225_v60, 0.0 }
 0x24f   :  { %230 = vadd.xlane.f32.xlu0 %v229_v63  ;;  %v228_v6 = vmul.f32 %v224_v61, %v224_v61 }
 0x250   :  { %v226_v2 = vmul.f32 %v222_v62, %v222_v62 }
 0x251   :  { %v238_v7 = vsel %vm148_vm2, %v228_v6, 0.0 }
 0x252   :  { %v232_v5 = vsel %vm148_vm2, %v226_v2, 0.0 }
 0x253   :  { %236 = vadd.xlane.f32.xlu0 %v235_v3  ;;  %233 = vadd.xlane.f32.xlu1 %v232_v5  ;;  %v1676_v3 = vld [vmem:[%s2410_s2 + $0x30] sm:$0xff]  ;;  %v1677_v5 = vld [vmem:[%s2410_s2 + $0x38] sm:$0xff] }
 0x254   :  { %v488_v6 = vpack.c.bf16 %v1677_v5, %v1676_v3 }
 0x257   :  { %239 = vadd.xlane.f32.xlu1 %v238_v7 }
 0x2dc   :  { %v231_v20 = vpop.xlane.xlu0 %230 }
 0x2dd   :  { %v241_v21 = vmul.f32 0.03125, %v231_v20 }
 0x2df   :  { %v245_v22 = vadd.f32 1e-05, %v241_v21 }
 0x2e0   :  { %v234_v23 = vpop.xlane.xlu1 %233  ;;  %v237_v24 = vpop.xlane.xlu0 %236 }
 0x2e1   :  { %1943 = vrsqrt.f32 %v245_v22  ;;  %v242_v25 = vmul.f32 0.03125, %v234_v23  ;;  %v243_v26 = vmul.f32 0.03125, %v237_v24  ;;  %v2186_v23 = vld [vmem:[%s2411_s3 + $0x4] sm:$0x7] }
 0x2e2   :  { %v492_v24 = vrot.slane %v2186_v23, %v2102_v35 }
 0x2e3   :  { %v246_v27 = vadd.f32 1e-05, %v242_v25  ;;  %v247_v28 = vadd.f32 1e-05, %v243_v26 }
 0x2e4   :  { %v240_v29 = vpop.xlane.xlu1 %239 }
 0x2e5   :  { %1945 = vrsqrt.f32 %v246_v27  ;;  %v244_v30 = vmul.f32 0.03125, %v240_v29 }
 0x2e6   :  { %1947 = vrsqrt.f32 %v247_v28 }
 0x2e7   :  { %v248_v32 = vadd.f32 1e-05, %v244_v30 }
 0x2e9   :  { %1949 = vrsqrt.f32 %v248_v32 }
 0x2eb   :  { %v1944_v39 = vpop.eup %1943 }
 0x2ec   :  { %v253_v40 = vmul.f32 %v1944_v39, %v221_v55 }
 0x2ee   :  { %v261_v42 = vmul.f32 %v260_v37, %v253_v40 }
 0x2ef   :  { %v1946_v43 = vpop.eup %1945 }
 0x2f0   :  { %v1948_v44 = vpop.eup %1947  ;;  %v254_v45 = vmul.f32 %v1946_v43, %v222_v62  ;;  %v269_v48 = vadd.f32 %v268_v41, %v261_v42  ;;  %v43_v62 = vld [vmem:[%s2412_s4 + $0x18] sm:$0xff] }
 0x2f1   :  { %v255_v46 = vmul.f32 %v1948_v44, %v223_v54 }
 0x2f2   :  { %v262_v47 = vmul.f32 %v260_v37, %v254_v45  ;;  %v273_v56 = vmax.f32 %v269_v48, 0.0 }
 0x2f3   :  { %v1950_v49 = vpop.eup %1949  ;;  %v263_v50 = vmul.f32 %v260_v37, %v255_v46 }
 0x2f4   :  { %v256_v51 = vmul.f32 %v1950_v49, %v224_v61  ;;  %v270_v52 = vadd.f32 %v268_v41, %v262_v47  ;;  %v42_v61 = vld [vmem:[%s2412_s4 + $0x10] sm:$0xff] }
 0x2f5   :  { %v271_v58 = vadd.f32 %v268_v41, %v263_v50  ;;  %v45_v63 = vpack.c.bf16 %v43_v62, %v42_v61  ;;  %v1680_v62 = vld [vmem:[%s2412_s4 + $0x40] sm:$0xff] }
 0x2f6   :  { %v264_v53 = vmul.f32 %v260_v37, %v256_v51  ;;  %v274_v57 = vmax.f32 %v270_v52, 0.0 }
 0x2f7   :  { %v275_v36 = vmax.f32 %v271_v58, 0.0 }
 0x2f8   :  { %v277_v59 = vpack.c.bf16 %v274_v57, %v273_v56  ;;  %v272_v55 = vadd.f32 %v268_v41, %v264_v53 }
 0x2fa   :  { %1804 = vmatprep.mubr.msk.bf16.mxu1 %vm148_vm2, %v277_v59  ;;  %1817 = vmatpush3.bf16.msra.mxu0 %v277_v59  ;;  %v276_v60 = vmax.f32 %v272_v55, 0.0 }
 0x2fb   :  { %1822 = vmatprep.subr.bf16.mxu0 %v1993_v0 }
 0x2fc   :  { %v278_v54 = vpack.c.bf16 %v276_v60, %v275_v36 }
 0x2fd   :  { %1819 = vmatmul.mubr.msk.bf16.vlgmr.msra.gmra.mrb[8].mxu0 %vm46_vm1, %v2065_v9 }
 0x2fe   :  { %1805 = vmatmul.mubr.msk.bf16.vlgmr.msra.gmra.mrb[4].mxu1 %vm148_vm2, %v278_v54  ;;  %1823 = vmatpush3.bf16.msra.mxu0 %v278_v54 }
 0x2ff   :  { %1824 = vmatprep.mubr.msk.bf16.mxu0 %vm1994_vm0, %v1993_v0  ;;  %1809 = vmatpush3.bf16.msra.mxu1 %v44_v19 }
 0x300   :  { %1812 = vmatprep.mubr.msk.bf16.mxu1 %vm148_vm2, %v2048_v4  ;;  %1844 = vmatprep.subr.bf16.mxu0 %v1993_v0  ;;  %v1674_v4 = vld [vmem:[%s2410_s2 + $0x20] sm:$0xff] }
 0x301   :  { %1810 = vmatprep.subr.bf16.mxu1 %v45_v63  ;;  %v487_v2 = vpack.c.bf16 %v1675_v1, %v1674_v4  ;;  %v1682_v1 = vld [vmem:[%s2412_s4 + $0x50] sm:$0xff] }
 0x303   :  { %1811 = vmatpush3.bf16.msra.mxu1 %v45_v63  ;;  %v1681_v63 = vld [vmem:[%s2412_s4 + $0x48] sm:$0xff] }
 0x304   :  { %1828 = vmatprep.subr.bf16.mxu1 %v487_v2  ;;  %v627_v4 = vpack.c.bf16 %v1681_v63, %v1680_v62 }
 0x305   :  { %1825 = vmatmul.mubr.msk.bf16.vlgmr.msra.gmra.mrb[12].mxu0 %vm46_vm1, %v2074_v12 }
 0x306   :  { %1846 = vmatprep.mubr.msk.bf16.mxu0 %vm1994_vm0, %v1993_v0 }
 0x30a   :  { %1813 = vmatmul.mubr.msk.bf16.vlgmr.msra.gmra.mrb[4].mxu1 %vm148_vm2, %v2063_v8 }
 0x30b   :  { %1829 = vmatpush3.bf16.msra.mxu1 %v487_v2  ;;  %v1683_v2 = vld [vmem:[%s2412_s4 + $0x58] sm:$0xff] }
 0x30c   :  { %1830 = vmatprep.subr.bf16.mxu1 %v488_v6  ;;  %v628_v3 = vpack.c.bf16 %v1683_v2, %v1682_v1 }
 0x30f   :  { %1831 = vmatpush3.bf16.msra.mxu1 %v488_v6 }
 0x310   :  { %1836 = vmatprep.subr.bf16.mxu1 %v627_v4 }
 0x3d0   :  { %v430_v7 = vpop.f32.mrb[8].mxu0 }
 0x3d1   :  { %v1820_v10 = vpop.f32.mrb[9].mxu0  ;;  %v431_v13 = vadd.f32 %v430_v7, %v273_v56 }
 0x3d2   :  { %v433_v11 = vpop.f32.mrb[10].mxu0 }
 0x3d3   :  { %v434_v14 = vadd.f32 %v433_v11, %v274_v57  ;;  %v1821_v15 = vpop.f32.mrb[11].mxu0 }
 0x3d5   :  { %v480_v8 = vpack.c.bf16 %v434_v14, %v431_v13 }
 0x3d7   :  { %1832 = vmatprep.mubr.msk.bf16.mxu1 %vm148_vm2, %v480_v8 }
 0x3d8   :  { %v471_v16 = vpop.f32.mrb[12].mxu0 }
 0x3d9   :  { %v1826_v17 = vpop.f32.mrb[13].mxu0  ;;  %v472_v19 = vadd.f32 %v471_v16, %v275_v36 }
 0x3da   :  { %v474_v18 = vpop.f32.mrb[14].mxu0 }
 0x3db   :  { %v475_v20 = vadd.f32 %v474_v18, %v276_v60  ;;  %v1827_v21 = vpop.f32.mrb[15].mxu0 }
 0x3dc   :  { %v611_v21 = vrot.slane %v2186_v23, %v2143_v38 }
 0x3dd   :  { %v481_v22 = vpack.c.bf16 %v475_v20, %v472_v19  ;;  %v603_v19 = vrot.slane %v2186_v23, %v2138_v31 }
 0x3df   :  { %1833 = vmatmul.mubr.msk.bf16.vlgmr.msra.gmra.mrb[8].mxu1 %vm148_vm2, %v481_v22 }
 0x3e0   :  { %1837 = vmatpush3.bf16.msra.mxu1 %v627_v4 }
 0x3e1   :  { %1838 = vmatprep.subr.bf16.mxu1 %v628_v3 }
 0x3e4   :  { %1839 = vmatpush3.bf16.msra.mxu1 %v628_v3 }
 0x4b2   :  { %v1834_v25 = vpop.f32.mrb[8].mxu1 }
 0x4b3   :  { %v533_v26 = vpop.f32.mrb[9].mxu1  ;;  %v542_v30 = vadd.f32 %v1834_v25, %v492_v24 }
 0x4b4   :  { %v534_v27 = vadd.f32 %v533_v26, %v492_v24  ;;  %v1835_v28 = vpop.f32.mrb[10].mxu1 }
 0x4b5   :  { %v536_v29 = vpop.f32.mrb[11].mxu1  ;;  %v545_v39 = vadd.f32 %v1835_v28, %v492_v24  ;;  %v554_v41 = vsel %vm148_vm2, %v542_v30, 0.0 }
 0x4b6   :  { %v537_v32 = vadd.f32 %v536_v29, %v492_v24  ;;  %v548_v37 = vsel %vm148_vm2, %v534_v27, 0.0 }
 0x4b7   :  { %549 = vadd.xlane.f32.xlu0 %v548_v37  ;;  %v557_v42 = vsel %vm148_vm2, %v545_v39, 0.0 }
 0x4b8   :  { %v551_v40 = vsel %vm148_vm2, %v537_v32, 0.0 }
 0x4b9   :  { %552 = vadd.xlane.f32.xlu1 %v551_v40 }
 0x4bb   :  { %555 = vadd.xlane.f32.xlu0 %v554_v41 }
 0x4bd   :  { %558 = vadd.xlane.f32.xlu1 %v557_v42 }
 0x544   :  { %v550_v43 = vpop.xlane.xlu0 %549 }
 0x545   :  { %v560_v44 = vmul.f32 0.03125, %v550_v43 }
 0x546   :  { %v553_v45 = vpop.xlane.xlu1 %552 }
 0x547   :  { %v564_v46 = vsub.f32 %v534_v27, %v560_v44  ;;  %v561_v47 = vmul.f32 0.03125, %v553_v45 }
 0x548   :  { %v556_v48 = vpop.xlane.xlu0 %555 }
 0x549   :  { %v565_v49 = vsub.f32 %v537_v32, %v561_v47  ;;  %v562_v50 = vmul.f32 0.03125, %v556_v48  ;;  %v568_v51 = vmul.f32 %v564_v46, %v564_v46 }
 0x54a   :  { %v559_v52 = vpop.xlane.xlu1 %558 }
 0x54b   :  { %v566_v53 = vsub.f32 %v542_v30, %v562_v50  ;;  %v563_v56 = vmul.f32 0.03125, %v559_v52  ;;  %v572_v57 = vsel %vm148_vm2, %v568_v51, 0.0  ;;  %v569_v58 = vmul.f32 %v565_v49, %v565_v49  ;;  %v1690_v50 = vld [vmem:[%s2410_s2 + $0x48] sm:$0xff]  ;;  %v1691_v52 = vld [vmem:[%s2410_s2 + $0x50] sm:$0xff] }
 0x54c   :  { %573 = vadd.xlane.f32.xlu0 %v572_v57 }
 0x54d   :  { %v567_v59 = vsub.f32 %v545_v39, %v563_v56  ;;  %v575_v55 = vsel %vm148_vm2, %v569_v58, 0.0  ;;  %v570_v36 = vmul.f32 %v566_v53, %v566_v53 }
 0x54e   :  { %576 = vadd.xlane.f32.xlu1 %v575_v55 }
 0x54f   :  { %v578_v60 = vsel %vm148_vm2, %v570_v36, 0.0  ;;  %v571_v54 = vmul.f32 %v567_v59, %v567_v59 }
 0x550   :  { %579 = vadd.xlane.f32.xlu0 %v578_v60 }
 0x551   :  { %v581_v61 = vsel %vm148_vm2, %v571_v54, 0.0 }
 0x552   :  { %582 = vadd.xlane.f32.xlu1 %v581_v61 }
 0x5d9   :  { %v574_v5 = vpop.xlane.xlu0 %573 }
 0x5da   :  { %v584_v6 = vmul.f32 0.03125, %v574_v5  ;;  %v2243_v5 = vld [vmem:[%s2411_s3 + $0x8] sm:$0x7] }
 0x5db   :  { %v577_v7 = vpop.xlane.xlu1 %576 }
 0x5dc   :  { %v588_v10 = vadd.f32 1e-05, %v584_v6  ;;  %v585_v11 = vmul.f32 0.03125, %v577_v7  ;;  %v784_v6 = vrot.slane %v2243_v5, %v2102_v35 }
 0x5dd   :  { %v580_v13 = vpop.xlane.xlu0 %579 }
 0x5de   :  { %1951 = vrsqrt.f32 %v588_v10  ;;  %v589_v14 = vadd.f32 1e-05, %v585_v11  ;;  %v586_v15 = vmul.f32 0.03125, %v580_v13 }
 0x5df   :  { %v583_v8 = vpop.xlane.xlu1 %582 }
 0x5e0   :  { %1953 = vrsqrt.f32 %v589_v14  ;;  %v590_v16 = vadd.f32 1e-05, %v586_v15  ;;  %v587_v17 = vmul.f32 0.03125, %v583_v8 }
 0x5e2   :  { %1955 = vrsqrt.f32 %v590_v16  ;;  %v591_v18 = vadd.f32 1e-05, %v587_v17 }
 0x5e4   :  { %1957 = vrsqrt.f32 %v591_v18 }
 0x5e8   :  { %v1952_v20 = vpop.eup %1951 }
 0x5e9   :  { %v596_v22 = vmul.f32 %v1952_v20, %v564_v46 }
 0x5ea   :  { %v1954_v24 = vpop.eup %1953 }
 0x5eb   :  { %v597_v25 = vmul.f32 %v1954_v24, %v565_v49  ;;  %v604_v26 = vmul.f32 %v603_v19, %v596_v22  ;;  %v1689_v49 = vld [vmem:[%s2410_s2 + $0x40] sm:$0xff] }
 0x5ec   :  { %v1956_v27 = vpop.eup %1955  ;;  %v779_v51 = vpack.c.bf16 %v1690_v50, %v1689_v49  ;;  %v1697_v50 = vld [vmem:[%s2412_s4 + $0x70] sm:$0xff] }
 0x5ed   :  { %v598_v28 = vmul.f32 %v1956_v27, %v566_v53  ;;  %v605_v29 = vmul.f32 %v603_v19, %v597_v25  ;;  %v612_v30 = vadd.f32 %v611_v21, %v604_v26  ;;  %v1692_v53 = vld [vmem:[%s2410_s2 + $0x58] sm:$0xff] }
 0x5ee   :  { %v1958_v32 = vpop.eup %1957  ;;  %1856 = vmatprep.subr.bf16.mxu1 %v779_v51  ;;  %v780_v56 = vpack.c.bf16 %v1692_v53, %v1691_v52 }
 0x5ef   :  { %v606_v37 = vmul.f32 %v603_v19, %v598_v28  ;;  %v599_v39 = vmul.f32 %v1958_v32, %v567_v59  ;;  %v613_v40 = vadd.f32 %v611_v21, %v605_v29  ;;  %v616_v42 = vmax.f32 %v612_v30, 0.0 }
 0x5f1   :  { %v607_v41 = vmul.f32 %v603_v19, %v599_v39  ;;  %v617_v43 = vmax.f32 %v613_v40, 0.0  ;;  %v614_v44 = vadd.f32 %v611_v21, %v606_v37 }
 0x5f3   :  { %v620_v45 = vpack.c.bf16 %v617_v43, %v616_v42  ;;  %v615_v47 = vadd.f32 %v611_v21, %v607_v41  ;;  %v618_v23 = vmax.f32 %v614_v44, 0.0 }
 0x5f5   :  { %1840 = vmatprep.mubr.msk.bf16.mxu1 %vm148_vm2, %v620_v45  ;;  %1845 = vmatpush3.bf16.msra.mxu0 %v620_v45  ;;  %v619_v46 = vmax.f32 %v615_v47, 0.0 }
 0x5f6   :  { %1850 = vmatprep.subr.bf16.mxu0 %v1993_v0 }
 0x5f7   :  { %v621_v48 = vpack.c.bf16 %v619_v46, %v618_v23 }
 0x5f8   :  { %1847 = vmatmul.mubr.msk.bf16.vlgmr.msra.gmra.mrb[16].mxu0 %vm46_vm1, %v2065_v9 }
 0x5f9   :  { %1841 = vmatmul.mubr.msk.bf16.vlgmr.msra.gmra.mrb[4].mxu1 %vm148_vm2, %v621_v48  ;;  %1851 = vmatpush3.bf16.msra.mxu0 %v621_v48  ;;  %v1696_v48 = vld [vmem:[%s2412_s4 + $0x68] sm:$0xff] }
 0x5fa   :  { %1852 = vmatprep.mubr.msk.bf16.mxu0 %vm1994_vm0, %v1993_v0  ;;  %1872 = vmatprep.subr.bf16.mxu0 %v1993_v0 }
 0x5fb   :  { %1857 = vmatpush3.bf16.msra.mxu1 %v779_v51  ;;  %v1698_v51 = vld [vmem:[%s2412_s4 + $0x78] sm:$0xff] }
 0x5fc   :  { %1858 = vmatprep.subr.bf16.mxu1 %v780_v56  ;;  %v920_v52 = vpack.c.bf16 %v1698_v51, %v1697_v50  ;;  %v2297_v51 = vld [vmem:[%s2411_s3 + $0xc] sm:$0x7] }
 0x5ff   :  { %1859 = vmatpush3.bf16.msra.mxu1 %v780_v56 }
 0x600   :  { %1853 = vmatmul.mubr.msk.bf16.vlgmr.msra.gmra.mrb[20].mxu0 %vm46_vm1, %v2074_v12 }
 0x601   :  { %1874 = vmatprep.mubr.msk.bf16.mxu0 %vm1994_vm0, %v1993_v0 }
 0x6cb   :  { %v722_v57 = vpop.f32.mrb[16].mxu0 }
 0x6cc   :  { %v1848_v58 = vpop.f32.mrb[17].mxu0  ;;  %v723_v55 = vadd.f32 %v722_v57, %v616_v42 }
 0x6cd   :  { %v725_v59 = vpop.f32.mrb[18].mxu0 }
 0x6ce   :  { %v726_v36 = vadd.f32 %v725_v59, %v617_v43  ;;  %v1849_v60 = vpop.f32.mrb[19].mxu0 }
 0x6d0   :  { %v772_v54 = vpack.c.bf16 %v726_v36, %v723_v55 }
 0x6d2   :  { %1860 = vmatprep.mubr.msk.bf16.mxu1 %vm148_vm2, %v772_v54 }
 0x6d3   :  { %v763_v61 = vpop.f32.mrb[20].mxu0 }
 0x6d4   :  { %v1854_v62 = vpop.f32.mrb[21].mxu0  ;;  %v764_v4 = vadd.f32 %v763_v61, %v618_v23 }
 0x6d5   :  { %v766_v63 = vpop.f32.mrb[22].mxu0 }
 0x6d6   :  { %v767_v1 = vadd.f32 %v766_v63, %v619_v46  ;;  %v1855_v2 = vpop.f32.mrb[23].mxu0  ;;  %v1695_v46 = vld [vmem:[%s2412_s4 + $0x60] sm:$0xff] }
 0x6d7   :  { %v919_v49 = vpack.c.bf16 %v1696_v48, %v1695_v46  ;;  %v903_v2 = vrot.slane %v2243_v5, %v2143_v38 }
 0x6d8   :  { %v773_v3 = vpack.c.bf16 %v767_v1, %v764_v4  ;;  %v895_v4 = vrot.slane %v2243_v5, %v2138_v31 }
 0x6d9   :  { %1864 = vmatprep.subr.bf16.mxu1 %v919_v49 }
 0x6da   :  { %1861 = vmatmul.mubr.msk.bf16.vlgmr.msra.gmra.mrb[12].mxu1 %vm148_vm2, %v773_v3 }
 0x6db   :  { %1865 = vmatpush3.bf16.msra.mxu1 %v919_v49 }
 0x6dc   :  { %1866 = vmatprep.subr.bf16.mxu1 %v920_v52 }
 0x6df   :  { %1867 = vmatpush3.bf16.msra.mxu1 %v920_v52  ;;  %v1076_v52 = vrot.slane %v2297_v51, %v2102_v35 }
 0x7ad   :  { %v1862_v7 = vpop.f32.mrb[12].mxu1 }
 0x7ae   :  { %v825_v10 = vpop.f32.mrb[13].mxu1  ;;  %v834_v15 = vadd.f32 %v1862_v7, %v784_v6 }
 0x7af   :  { %v826_v11 = vadd.f32 %v825_v10, %v784_v6  ;;  %v1863_v13 = vpop.f32.mrb[14].mxu1 }
 0x7b0   :  { %v828_v14 = vpop.f32.mrb[15].mxu1  ;;  %v837_v17 = vadd.f32 %v1863_v13, %v784_v6  ;;  %v846_v19 = vsel %vm148_vm2, %v834_v15, 0.0 }
 0x7b1   :  { %v829_v8 = vadd.f32 %v828_v14, %v784_v6  ;;  %v840_v16 = vsel %vm148_vm2, %v826_v11, 0.0 }
 0x7b2   :  { %841 = vadd.xlane.f32.xlu0 %v840_v16  ;;  %v849_v20 = vsel %vm148_vm2, %v837_v17, 0.0 }
 0x7b3   :  { %v843_v18 = vsel %vm148_vm2, %v829_v8, 0.0 }
 0x7b4   :  { %844 = vadd.xlane.f32.xlu1 %v843_v18 }
 0x7b6   :  { %847 = vadd.xlane.f32.xlu0 %v846_v19 }
 0x7b8   :  { %850 = vadd.xlane.f32.xlu1 %v849_v20 }
 0x83f   :  { %v842_v21 = vpop.xlane.xlu0 %841 }
 0x840   :  { %v852_v22 = vmul.f32 0.03125, %v842_v21 }
 0x841   :  { %v845_v24 = vpop.xlane.xlu1 %844 }
 0x842   :  { %v856_v25 = vsub.f32 %v826_v11, %v852_v22  ;;  %v853_v26 = vmul.f32 0.03125, %v845_v24 }
 0x843   :  { %v848_v27 = vpop.xlane.xlu0 %847 }
 0x844   :  { %v857_v28 = vsub.f32 %v829_v8, %v853_v26  ;;  %v854_v29 = vmul.f32 0.03125, %v848_v27  ;;  %v860_v30 = vmul.f32 %v856_v25, %v856_v25 }
 0x845   :  { %v851_v32 = vpop.xlane.xlu1 %850 }
 0x846   :  { %v858_v37 = vsub.f32 %v834_v15, %v854_v29  ;;  %v855_v39 = vmul.f32 0.03125, %v851_v32  ;;  %v864_v40 = vsel %vm148_vm2, %v860_v30, 0.0  ;;  %v861_v41 = vmul.f32 %v857_v28, %v857_v28  ;;  %v1705_v29 = vld [vmem:[%s2410_s2 + $0x68] sm:$0xff]  ;;  %v1707_v32 = vld [vmem:[%s2410_s2 + $0x78] sm:$0xff] }
 0x847   :  { %865 = vadd.xlane.f32.xlu0 %v864_v40 }
 0x848   :  { %v859_v42 = vsub.f32 %v837_v17, %v855_v39  ;;  %v867_v43 = vsel %vm148_vm2, %v861_v41, 0.0  ;;  %v862_v44 = vmul.f32 %v858_v37, %v858_v37 }
 0x849   :  { %868 = vadd.xlane.f32.xlu1 %v867_v43 }
 0x84a   :  { %v870_v45 = vsel %vm148_vm2, %v862_v44, 0.0  ;;  %v863_v47 = vmul.f32 %v859_v42, %v859_v42 }
 0x84b   :  { %871 = vadd.xlane.f32.xlu0 %v870_v45 }
 0x84c   :  { %v873_v23 = vsel %vm148_vm2, %v863_v47, 0.0 }
 0x84d   :  { %874 = vadd.xlane.f32.xlu1 %v873_v23 }
 0x8d4   :  { %v866_v53 = vpop.xlane.xlu0 %865 }
 0x8d5   :  { %v876_v56 = vmul.f32 0.03125, %v866_v53 }
 0x8d6   :  { %v869_v57 = vpop.xlane.xlu1 %868 }
 0x8d7   :  { %v880_v58 = vadd.f32 1e-05, %v876_v56  ;;  %v877_v59 = vmul.f32 0.03125, %v869_v57 }
 0x8d8   :  { %v872_v55 = vpop.xlane.xlu0 %871 }
 0x8d9   :  { %1959 = vrsqrt.f32 %v880_v58  ;;  %v881_v36 = vadd.f32 1e-05, %v877_v59  ;;  %v878_v60 = vmul.f32 0.03125, %v872_v55 }
 0x8da   :  { %v875_v54 = vpop.xlane.xlu1 %874 }
 0x8db   :  { %1961 = vrsqrt.f32 %v881_v36  ;;  %v882_v61 = vadd.f32 1e-05, %v878_v60  ;;  %v879_v62 = vmul.f32 0.03125, %v875_v54 }
 0x8dd   :  { %1963 = vrsqrt.f32 %v882_v61  ;;  %v883_v63 = vadd.f32 1e-05, %v879_v62 }
 0x8df   :  { %1965 = vrsqrt.f32 %v883_v63 }
 0x8e3   :  { %v1960_v1 = vpop.eup %1959 }
 0x8e4   :  { %v888_v3 = vmul.f32 %v1960_v1, %v856_v25 }
 0x8e5   :  { %v1962_v6 = vpop.eup %1961 }
 0x8e6   :  { %v889_v7 = vmul.f32 %v1962_v6, %v857_v28  ;;  %v896_v10 = vmul.f32 %v895_v4, %v888_v3  ;;  %v1704_v28 = vld [vmem:[%s2410_s2 + $0x60] sm:$0xff] }
 0x8e7   :  { %v1964_v11 = vpop.eup %1963  ;;  %v1071_v30 = vpack.c.bf16 %v1705_v29, %v1704_v28  ;;  %v1713_v28 = vld [vmem:[%s2412_s4 + $0x98] sm:$0xff] }
 0x8e8   :  { %v890_v13 = vmul.f32 %v1964_v11, %v858_v37  ;;  %v897_v14 = vmul.f32 %v895_v4, %v889_v7  ;;  %v904_v15 = vadd.f32 %v903_v2, %v896_v10 }
 0x8e9   :  { %v1966_v8 = vpop.eup %1965  ;;  %1884 = vmatprep.subr.bf16.mxu1 %v1071_v30 }
 0x8ea   :  { %v898_v16 = vmul.f32 %v895_v4, %v890_v13  ;;  %v891_v17 = vmul.f32 %v1966_v8, %v859_v42  ;;  %v905_v18 = vadd.f32 %v903_v2, %v897_v14  ;;  %v908_v20 = vmax.f32 %v904_v15, 0.0 }
 0x8ec   :  { %v899_v19 = vmul.f32 %v895_v4, %v891_v17  ;;  %v909_v21 = vmax.f32 %v905_v18, 0.0  ;;  %v906_v22 = vadd.f32 %v903_v2, %v898_v16 }
 0x8ee   :  { %v912_v24 = vpack.c.bf16 %v909_v21, %v908_v20  ;;  %v907_v26 = vadd.f32 %v903_v2, %v899_v19  ;;  %v910_v5 = vmax.f32 %v906_v22, 0.0 }
 0x8f0   :  { %1868 = vmatprep.mubr.msk.bf16.mxu1 %vm148_vm2, %v912_v24  ;;  %1873 = vmatpush3.bf16.msra.mxu0 %v912_v24  ;;  %v911_v25 = vmax.f32 %v907_v26, 0.0  ;;  %v1710_v26 = vld [vmem:[%s2412_s4 + $0x80] sm:$0xff] }
 0x8f1   :  { %1878 = vmatprep.subr.bf16.mxu0 %v1993_v0 }
 0x8f2   :  { %v913_v27 = vpack.c.bf16 %v911_v25, %v910_v5 }
 0x8f3   :  { %1875 = vmatmul.mubr.msk.bf16.vlgmr.msra.gmra.mrb[24].mxu0 %vm46_vm1, %v2065_v9  ;;  %v1706_v9 = vld [vmem:[%s2410_s2 + $0x70] sm:$0xff] }
 0x8f4   :  { %1869 = vmatmul.mubr.msk.bf16.vlgmr.msra.gmra.mrb[4].mxu1 %vm148_vm2, %v913_v27  ;;  %1879 = vmatpush3.bf16.msra.mxu0 %v913_v27  ;;  %v1712_v27 = vld [vmem:[%s2412_s4 + $0x90] sm:$0xff] }
 0x8f5   :  { %1880 = vmatprep.mubr.msk.bf16.mxu0 %vm1994_vm0, %v1993_v0  ;;  %1885 = vmatpush3.bf16.msra.mxu1 %v1071_v30  ;;  %v1212_v29 = vpack.c.bf16 %v1713_v28, %v1712_v27 }
 0x8fb   :  { %1881 = vmatmul.mubr.msk.bf16.vlgmr.msra.gmra.mrb[28].mxu0 %vm46_vm1, %v2074_v12  ;;  %v1072_v12 = vpack.c.bf16 %v1707_v32, %v1706_v9 }
 0x8fd   :  { %1886 = vmatprep.subr.bf16.mxu1 %v1072_v12 }
 0x8fe   :  { %1887 = vmatpush3.bf16.msra.mxu1 %v1072_v12 }
 0x9c6   :  { %v1014_v37 = vpop.f32.mrb[24].mxu0 }
 0x9c7   :  { %v1876_v39 = vpop.f32.mrb[25].mxu0  ;;  %v1015_v41 = vadd.f32 %v1014_v37, %v908_v20 }
 0x9c8   :  { %v1017_v40 = vpop.f32.mrb[26].mxu0 }
 0x9c9   :  { %v1018_v42 = vadd.f32 %v1017_v40, %v909_v21  ;;  %v1877_v43 = vpop.f32.mrb[27].mxu0 }
 0x9cb   :  { %v1064_v44 = vpack.c.bf16 %v1018_v42, %v1015_v41 }
 0x9cd   :  { %1888 = vmatprep.mubr.msk.bf16.mxu1 %vm148_vm2, %v1064_v44 }
 0x9ce   :  { %v1055_v45 = vpop.f32.mrb[28].mxu0 }
 0x9cf   :  { %v1882_v47 = vpop.f32.mrb[29].mxu0  ;;  %v1056_v46 = vadd.f32 %v1055_v45, %v910_v5  ;;  %v1711_v5 = vld [vmem:[%s2412_s4 + $0x88] sm:$0xff] }
 0x9d0   :  { %v1058_v23 = vpop.f32.mrb[30].mxu0  ;;  %v1187_v47 = vrot.slane %v2297_v51, %v2138_v31 }
 0x9d1   :  { %v1059_v48 = vadd.f32 %v1058_v23, %v911_v25  ;;  %v1883_v49 = vpop.f32.mrb[31].mxu0  ;;  %v1211_v25 = vpack.c.bf16 %v1711_v5, %v1710_v26 }
 0x9d3   :  { %v1065_v50 = vpack.c.bf16 %v1059_v48, %v1056_v46  ;;  %1892 = vmatprep.subr.bf16.mxu1 %v1211_v25  ;;  %v1195_v46 = vrot.slane %v2297_v51, %v2143_v38 }
 0x9d5   :  { %1889 = vmatmul.mubr.msk.bf16.vlgmr.msra.gmra.mrb[16].mxu1 %vm148_vm2, %v1065_v50 }
 0x9d6   :  { %1893 = vmatpush3.bf16.msra.mxu1 %v1211_v25 }
 0x9d7   :  { %1894 = vmatprep.subr.bf16.mxu1 %v1212_v29 }
 0x9da   :  { %1895 = vmatpush3.bf16.msra.mxu1 %v1212_v29 }
 0x9db   :  { %1914 = vmatprep.subr.bf16.mxu1 %v1993_v0 }
 0xaa8   :  { %v1890_v53 = vpop.f32.mrb[16].mxu1 }
 0xaa9   :  { %v1117_v56 = vpop.f32.mrb[17].mxu1  ;;  %v1126_v55 = vadd.f32 %v1890_v53, %v1076_v52 }
 0xaaa   :  { %v1118_v57 = vadd.f32 %v1117_v56, %v1076_v52  ;;  %v1891_v58 = vpop.f32.mrb[18].mxu1 }
 0xaab   :  { %v1120_v59 = vpop.f32.mrb[19].mxu1  ;;  %v1129_v54 = vadd.f32 %v1891_v58, %v1076_v52  ;;  %v1138_v62 = vsel %vm148_vm2, %v1126_v55, 0.0 }
 0xaac   :  { %v1121_v36 = vadd.f32 %v1120_v59, %v1076_v52  ;;  %v1132_v60 = vsel %vm148_vm2, %v1118_v57, 0.0 }
 0xaad   :  { %1133 = vadd.xlane.f32.xlu0 %v1132_v60  ;;  %v1141_v63 = vsel %vm148_vm2, %v1129_v54, 0.0 }
 0xaae   :  { %v1135_v61 = vsel %vm148_vm2, %v1121_v36, 0.0 }
 0xaaf   :  { %1136 = vadd.xlane.f32.xlu1 %v1135_v61 }
 0xab1   :  { %1139 = vadd.xlane.f32.xlu0 %v1138_v62 }
 0xab3   :  { %1142 = vadd.xlane.f32.xlu1 %v1141_v63 }
 0xb3a   :  { %v1134_v4 = vpop.xlane.xlu0 %1133 }
 0xb3b   :  { %v1144_v1 = vmul.f32 0.03125, %v1134_v4 }
 0xb3c   :  { %v1137_v2 = vpop.xlane.xlu1 %1136 }
 0xb3d   :  { %v1148_v3 = vsub.f32 %v1118_v57, %v1144_v1  ;;  %v1145_v6 = vmul.f32 0.03125, %v1137_v2 }
 0xb3e   :  { %v1140_v7 = vpop.xlane.xlu0 %1139 }
 0xb3f   :  { %v1149_v10 = vsub.f32 %v1121_v36, %v1145_v6  ;;  %v1146_v11 = vmul.f32 0.03125, %v1140_v7  ;;  %v1152_v13 = vmul.f32 %v1148_v3, %v1148_v3  ;;  %v1286_v6 = vld [vmem:[%s2413_s5] sm:$0xff]  ;;  %v1287_v7 = vld [vmem:[%s2413_s5 + $0x8] sm:$0xff] }
 0xb40   :  { %v1143_v14 = vpop.xlane.xlu1 %1142 }
 0xb41   :  { %v1150_v15 = vsub.f32 %v1126_v55, %v1146_v11  ;;  %v1147_v8 = vmul.f32 0.03125, %v1143_v14  ;;  %v1156_v16 = vsel %vm148_vm2, %v1152_v13, 0.0  ;;  %v1153_v17 = vmul.f32 %v1149_v10, %v1149_v10  ;;  %v1288_v11 = vld [vmem:[%s2413_s5 + $0x10] sm:$0xff]  ;;  %v1289_v13 = vld [vmem:[%s2413_s5 + $0x18] sm:$0xff] }
 0xb42   :  { %1157 = vadd.xlane.f32.xlu0 %v1156_v16  ;;  %v1291_v14 = vpack.c.bf16 %v1289_v13, %v1288_v11 }
 0xb43   :  { %v1151_v18 = vsub.f32 %v1129_v54, %v1147_v8  ;;  %v1159_v19 = vsel %vm148_vm2, %v1153_v17, 0.0  ;;  %v1154_v20 = vmul.f32 %v1150_v15, %v1150_v15 }
 0xb44   :  { %1160 = vadd.xlane.f32.xlu1 %v1159_v19 }
 0xb45   :  { %v1162_v21 = vsel %vm148_vm2, %v1154_v20, 0.0  ;;  %v1155_v22 = vmul.f32 %v1151_v18, %v1151_v18 }
 0xb46   :  { %1163 = vadd.xlane.f32.xlu0 %v1162_v21 }
 0xb47   :  { %v1165_v24 = vsel %vm148_vm2, %v1155_v22, 0.0 }
 0xb48   :  { %1166 = vadd.xlane.f32.xlu1 %v1165_v24 }
 0xbcf   :  { %v1158_v30 = vpop.xlane.xlu0 %1157 }
 0xbd0   :  { %v1168_v9 = vmul.f32 0.03125, %v1158_v30 }
 0xbd1   :  { %v1161_v32 = vpop.xlane.xlu1 %1160 }
 0xbd2   :  { %v1172_v12 = vadd.f32 1e-05, %v1168_v9  ;;  %v1169_v37 = vmul.f32 0.03125, %v1161_v32 }
 0xbd3   :  { %v1164_v39 = vpop.xlane.xlu0 %1163 }
 0xbd4   :  { %1967 = vrsqrt.f32 %v1172_v12  ;;  %v1173_v40 = vadd.f32 1e-05, %v1169_v37  ;;  %v1170_v41 = vmul.f32 0.03125, %v1164_v39 }
 0xbd5   :  { %v1167_v42 = vpop.xlane.xlu1 %1166 }
 0xbd6   :  { %1969 = vrsqrt.f32 %v1173_v40  ;;  %v1174_v43 = vadd.f32 1e-05, %v1170_v41  ;;  %v1171_v44 = vmul.f32 0.03125, %v1167_v42 }
 0xbd8   :  { %1971 = vrsqrt.f32 %v1174_v43  ;;  %v1175_v45 = vadd.f32 1e-05, %v1171_v44 }
 0xbda   :  { %1973 = vrsqrt.f32 %v1175_v45 }
 0xbde   :  { %v1968_v23 = vpop.eup %1967 }
 0xbdf   :  { %v1180_v48 = vmul.f32 %v1968_v23, %v1148_v3 }
 0xbe0   :  { %v1970_v49 = vpop.eup %1969 }
 0xbe1   :  { %v1181_v50 = vmul.f32 %v1970_v49, %v1149_v10  ;;  %v1188_v52 = vmul.f32 %v1187_v47, %v1180_v48  ;;  %v1290_v10 = vpack.c.bf16 %v1287_v7, %v1286_v6 }
 0xbe2   :  { %v1972_v53 = vpop.eup %1971 }
 0xbe3   :  { %v1182_v56 = vmul.f32 %v1972_v53, %v1150_v15  ;;  %v1189_v57 = vmul.f32 %v1187_v47, %v1181_v50  ;;  %v1196_v58 = vadd.f32 %v1195_v46, %v1188_v52  ;;  %1900 = vmatprep.subr.bf16.mxu0 %v1290_v10  ;;  %v2346_v15 = vld [vmem:[%s2414_s6] sm:$0xff] }
 0xbe4   :  { %v1974_v59 = vpop.eup %1973  ;;  %1901 = vmatpush3.bf16.msra.mxu0 %v1290_v10  ;;  %v1275_v8 = vrot.slane %v2346_v15, %v2102_v35  ;;  %v1295_v30 = vrot.slane %v2346_v15, %v2138_v31  ;;  %v1358_v43 = vrot.slane %v2346_v15, %v2143_v38  ;;  %v1378_v38 = vsub.s32 4, %v2099_v34 }
 0xbe5   :  { %v1190_v55 = vmul.f32 %v1187_v47, %v1182_v56  ;;  %v1183_v36 = vmul.f32 %v1974_v59, %v1151_v18  ;;  %v1197_v60 = vadd.f32 %v1195_v46, %v1189_v57  ;;  %v1200_v61 = vmax.f32 %v1196_v58, 0.0  ;;  %1902 = vmatprep.subr.bf16.mxu0 %v1291_v14 }
 0xbe6   :  { %v1995_v57 = vmov 0   ;;  %v2360_v58 = vrot.slane %v2346_v15, %v1378_v38 }
 0xbe7   :  { %v1191_v54 = vmul.f32 %v1187_v47, %v1183_v36  ;;  %v1201_v62 = vmax.f32 %v1197_v60, 0.0  ;;  %v1198_v63 = vadd.f32 %v1195_v46, %v1190_v55  ;;  %1940 = vset.pattern.permute.xlu0 %v1995_v57  ;;  %1941 = vset.pattern.permute.xlu1 %v1995_v57 }
 0xbe8   :  { %1903 = vmatpush3.bf16.msra.mxu0 %v1291_v14 }
 0xbe9   :  { %v1204_v4 = vpack.c.bf16 %v1201_v62, %v1200_v61  ;;  %v1199_v1 = vadd.f32 %v1195_v46, %v1191_v54  ;;  %v1202_v51 = vmax.f32 %v1198_v63, 0.0  ;;  %1908 = vmatprep.subr.bf16.mxu0 %v1993_v0 }
 0xbeb   :  { %1896 = vmatprep.mubr.msk.bf16.mxu1 %vm148_vm2, %v1204_v4  ;;  %v1203_v2 = vmax.f32 %v1199_v1, 0.0  ;;  %v1401_v4 = vand.u32 127, %v144_v33 }
 0xbed   :  { %v1205_v3 = vpack.c.bf16 %v1203_v2, %v1202_v51  ;;  %v1406_v1 = vadd.s32 4294967288, %v1401_v4  ;;  %v2371_v6 = vsub.s32 %v1401_v4, %v2099_v34 }
 0xbef   :  { %1897 = vmatmul.mubr.msk.bf16.vlgmr.msra.gmra.mrb[4].mxu1 %vm148_vm2, %v1205_v3  ;;  %v2368_v2 = vsub.s32 %v1406_v1, %v2099_v34 }
 0xbf0   :  { %1916 = vmatprep.mubr.msk.bf16.mxu1 %vm1994_vm0, %v1993_v0 }
 0xcc2   :  { %v1898_v16 = vpop.f32.mrb[4].mxu1 }
 0xcc3   :  { %v1278_v17 = vadd.f32 %v1898_v16, %v1275_v8  ;;  %v1253_v18 = vpop.f32.mrb[5].mxu1 }
 0xcc4   :  { %v1276_v19 = vadd.f32 %v1275_v8, %v1253_v18  ;;  %v1899_v20 = vpop.f32.mrb[6].mxu1 }
 0xcc5   :  { %v1279_v21 = vadd.f32 %v1899_v20, %v1275_v8  ;;  %v1256_v22 = vpop.f32.mrb[7].mxu1  ;;  %v1282_v26 = vmax.f32 %v1278_v17, 0.0 }
 0xcc6   :  { %v1277_v24 = vadd.f32 %v1275_v8, %v1256_v22  ;;  %v1280_v25 = vmax.f32 %v1276_v19, 0.0 }
 0xcc7   :  { %v1283_v5 = vmax.f32 %v1279_v21, 0.0 }
 0xcc8   :  { %v1281_v27 = vmax.f32 %v1277_v24, 0.0 }
 0xcc9   :  { %v1285_v28 = vpack.c.bf16 %v1283_v5, %v1282_v26 }
 0xcca   :  { %v1284_v29 = vpack.c.bf16 %v1281_v27, %v1280_v25 }
 0xccb   :  { %1915 = vmatpush3.bf16.msra.mxu1 %v1285_v28 }
 0xccc   :  { %1904 = vmatprep.mubr.msk.bf16.mxu0 %vm148_vm2, %v1284_v29 }
 0xccd   :  { %1905 = vmatmul.mubr.msk.bf16.vlgmr.msra.gmra.mrb[32].mxu0 %vm148_vm2, %v1285_v28 }
 0xcce   :  { %1909 = vmatpush3.bf16.msra.mxu0 %v1284_v29  ;;  %1910 = vmatprep.mubr.msk.bf16.mxu0 %vm1994_vm0, %v1993_v0 }
 0xda0   :  { %v1906_v9 = vpop.f32.mrb[32].mxu0 }
 0xda1   :  { %v1345_v32 = vadd.f32 %v1906_v9, %v1295_v30  ;;  %v1336_v12 = vpop.f32.mrb[33].mxu0 }
 0xda2   :  { %v1337_v37 = vadd.f32 %v1336_v12, %v1295_v30  ;;  %v1907_v39 = vpop.f32.mrb[34].mxu0 }
 0xda3   :  { %1975 = vtanh.f32 %v1345_v32  ;;  %v1348_v40 = vadd.f32 %v1907_v39, %v1295_v30  ;;  %v1339_v41 = vpop.f32.mrb[35].mxu0 }
 0xda4   :  { %1977 = vtanh.f32 %v1337_v37  ;;  %v1340_v42 = vadd.f32 %v1339_v41, %v1295_v30 }
 0xda5   :  { %1979 = vtanh.f32 %v1348_v40 }
 0xda6   :  { %1981 = vtanh.f32 %v1340_v42 }
 0xdad   :  { %v1976_v44 = vpop.eup %1975 }
 0xdae   :  { %v1978_v0 = vpop.eup %1977  ;;  %v1361_v49 = vmul.f32 %v1976_v44, %v1358_v43 }
 0xdaf   :  { %v1980_v45 = vpop.eup %1979  ;;  %v1359_v47 = vmul.f32 %v1978_v0, %v1358_v43 }
 0xdb0   :  { %v1982_v23 = vpop.eup %1981  ;;  %v1362_v52 = vmul.f32 %v1980_v45, %v1358_v43  ;;  %v1370_v53 = vsel %vm1363_vm3, %v1361_v49, 0.0 }
 0xdb1   :  { %v1364_v46 = vsel %vm1363_vm3, %v1359_v47, 0.0  ;;  %v1360_v48 = vmul.f32 %v1982_v23, %v1358_v43 }
 0xdb2   :  { %1365 = vadd.xlane.f32.xlu0 %v1364_v46  ;;  %v1373_v56 = vsel %vm1363_vm3, %v1362_v52, 0.0 }
 0xdb3   :  { %v1367_v50 = vsel %vm1363_vm3, %v1360_v48, 0.0 }
 0xdb4   :  { %1368 = vadd.xlane.f32.xlu1 %v1367_v50 }
 0xdb6   :  { %1371 = vadd.xlane.f32.xlu0 %v1370_v53 }
 0xdb8   :  { %1374 = vadd.xlane.f32.xlu1 %v1373_v56 }
 0xe3f   :  { %v1366_v59 = vpop.xlane.xlu0 %1365 }
 0xe40   :  { %v1380_v55 = vadd.f32 %v2360_v58, %v1366_v59 }
 0xe41   :  { %v1369_v36 = vpop.xlane.xlu1 %1368 }
 0xe42   :  { %1389 = vperm.xlu0 %1940, %v1380_v55   ;;  %v1381_v61 = vadd.f32 %v2360_v58, %v1369_v36 }
 0xe43   :  { %v1372_v60 = vpop.xlane.xlu0 %1371 }
 0xe44   :  { %v1382_v54 = vadd.f32 %v2360_v58, %v1372_v60 }
 0xe45   :  { %v1375_v62 = vpop.xlane.xlu1 %1374 }
 0xe46   :  { %1395 = vperm.xlu1 %1941, %v1382_v54   ;;  %v1383_v63 = vadd.f32 %v2360_v58, %v1375_v62 }
 0xe4a   :  { %1392 = vperm.xlu1 %1941, %v1381_v61  }
 0xe4e   :  { %1398 = vperm.xlu1 %1941, %v1383_v63  }
 0xec1   :  { %v1390_v7 = vpop.permute.xlu0 %1389 }
 0xec2   :  { %v1405_v13 = vrot.slane %v1390_v7, %v2371_v6 }
 0xec5   :  { %v1396_v51 = vpop.permute.xlu1 %1395 }
 0xec6   :  { %v1416_v14 = vrot.slane %v1396_v51, %v2371_v6 }
 0xec9   :  { %v1393_v3 = vpop.permute.xlu1 %1392 }
 0xeca   :  { %v1410_v10 = vrot.slane %v1393_v3, %v2368_v2 }
 0xecc   :  { %v1412_v8 = vsel %vm1411_vm4, %v1410_v10, %v1405_v13 }
 0xecd   :  { %v1399_v11 = vpop.permute.xlu1 %1398 }
 0xece   :  { %v1420_v33 = vrot.slane %v1399_v11, %v2368_v2 }
 0xed0   :  { %v1421_v16 = vsel %vm1411_vm4, %v1420_v33, %v1416_v14  ;;  %v1635_v14 = vsub.s32 3, %v2099_v34 }
 0xed1   :  { %v1423_v17 = vsel %vm1422_vm5, %v1421_v16, %v1412_v8 }
 0xed2   :  { %v1426_v18 = vsel %vm1425_vm6, %v1423_v17, -inf  ;;  %v1636_v8 = vrot.slane %v2346_v15, %v1635_v14 }
 0xed3   :  { %1427 = vmax.xlane.f32.xlu1 %v1426_v18 }
 0xf60   :  { %v1428_v19 = vpop.xlane.xlu1 %1427 }
 0xf61   :  { %v1433_v20 = vrot.slane %v1428_v19, %v2102_v35  ;;  %v1437_v21 = vrot.slane %v1428_v19, %v2138_v31 }
 0xf63   :  { %v1440_v22 = vsub.f32 %v1380_v55, %v1433_v20  ;;  %v1441_v24 = vsub.f32 %v1381_v61, %v1433_v20  ;;  %v1442_v5 = vsub.f32 %v1382_v54, %v1437_v21  ;;  %v1443_v27 = vsub.f32 %v1383_v63, %v1437_v21 }
 0xf65   :  { %v1444_v26 = vmul.f32 1.442695, %v1440_v22  ;;  %v1446_v25 = vmul.f32 1.442695, %v1441_v24  ;;  %v1448_v28 = vmul.f32 1.442695, %v1442_v5 }
 0xf66   :  { %v1450_v29 = vmul.f32 1.442695, %v1443_v27 }
 0xf67   :  { %1983 = vpow2.f32 %v1444_v26 }
 0xf68   :  { %1985 = vpow2.f32 %v1446_v25  ;;  %v1996_v25 = vmov 1  }
 0xf69   :  { %1987 = vpow2.f32 %v1448_v28 }
 0xf6a   :  { %1989 = vpow2.f32 %v1450_v29 }
 0xf71   :  { %v1984_v30 = vpop.eup %1983 }
 0xf72   :  { %1457 = vperm.xlu0 %1940, %v1984_v30   ;;  %v1986_v9 = vpop.eup %1985 }
 0xf73   :  { %v1988_v32 = vpop.eup %1987 }
 0xf74   :  { %v1990_v12 = vpop.eup %1989 }
 0xf76   :  { %1460 = vperm.xlu0 %1940, %v1986_v9  }
 0xf7a   :  { %1463 = vperm.xlu0 %1940, %v1988_v32  }
 0xf7e   :  { %1466 = vperm.xlu0 %1940, %v1990_v12  }
 0xf82   :  { %1942 = vset.pattern.permute.xlu0 %v1996_v25 }
 0xff1   :  { %v1458_v37 = vpop.permute.xlu0 %1457 }
 0xff2   :  { %v1471_v43 = vrot.slane %v1458_v37, %v2371_v6 }
 0xff5   :  { %v1461_v39 = vpop.permute.xlu0 %1460 }
 0xff6   :  { %v1475_v41 = vrot.slane %v1461_v39, %v2368_v2 }
 0xff8   :  { %v1476_v45 = vsel %vm1411_vm4, %v1475_v41, %v1471_v43 }
 0xff9   :  { %v1464_v40 = vpop.permute.xlu0 %1463 }
 0xffa   :  { %v1480_v44 = vrot.slane %v1464_v40, %v2371_v6 }
 0xffd   :  { %v1467_v42 = vpop.permute.xlu0 %1466 }
 0xffe   :  { %v1484_v0 = vrot.slane %v1467_v42, %v2368_v2 }
0x1000   :  { %v1485_v47 = vsel %vm1411_vm4, %v1484_v0, %v1480_v44 }
0x1001   :  { %v1486_v23 = vsel %vm1422_vm5, %v1485_v47, %v1476_v45 }
0x1002   :  { %v1488_v46 = vsel %vm1425_vm6, %v1486_v23, 0.0 }
0x1003   :  { %1489 = vadd.xlane.f32.xlu0 %v1488_v46 }
0x1090   :  { %v1490_v48 = vpop.xlane.xlu0 %1489 }
0x1091   :  { %1991 = vrcp.f32 %v1490_v48 }
0x109b   :  { %v1992_v49 = vpop.eup %1991 }
0x109c   :  { %v1500_v50 = vrot.slane %v1992_v49, %v2138_v31  ;;  %v1496_v56 = vrot.slane %v1992_v49, %v2102_v35 }
0x109e   :  { %v1505_v52 = vmul.f32 %v1988_v32, %v1500_v50  ;;  %v1506_v53 = vmul.f32 %v1990_v12, %v1500_v50  ;;  %v1503_v59 = vmul.f32 %v1984_v30, %v1496_v56  ;;  %v1504_v55 = vmul.f32 %v1986_v9, %v1496_v56 }
0x10a0   :  { %v1508_v57 = vpack.c.bf16 %v1506_v53, %v1505_v52  ;;  %v1507_v60 = vpack.c.bf16 %v1504_v55, %v1503_v59 }
0x10a2   :  { %v1572_v38 = vunpack.c.l.b16 %v1508_v57  ;;  %v1573_v36 = vunpack.c.h.b16 %v1508_v57  ;;  %v1510_v54 = vunpack.c.l.b16 %v1507_v60  ;;  %v1511_v61 = vunpack.c.h.b16 %v1507_v60 }
0x10a4   :  { %1575 = vperm.xlu1 %1941, %v1572_v38  }
0x10a8   :  { %1578 = vperm.xlu1 %1941, %v1573_v36  }
0x10ac   :  { %1513 = vperm.xlu1 %1941, %v1510_v54  }
0x10b0   :  { %1516 = vperm.xlu1 %1941, %v1511_v61  }
0x1123   :  { %v1576_v62 = vpop.permute.xlu1 %1575 }
0x1124   :  { %v1583_v31 = vrot.slane %v1576_v62, %v2371_v6 }
0x1127   :  { %v1579_v63 = vpop.permute.xlu1 %1578 }
0x1128   :  { %v1587_v4 = vrot.slane %v1579_v63, %v2368_v2 }
0x112a   :  { %v1588_v35 = vsel %vm1411_vm4, %v1587_v4, %v1583_v31 }
0x112b   :  { %v1589_v1 = vpack.c.b16 %v1588_v35, %v1588_v35  ;;  %v1514_v51 = vpop.permute.xlu1 %1513 }
0x112c   :  { %v1521_v7 = vrot.slane %v1514_v51, %v2371_v6 }
0x112d   :  { %1917 = vmatmul.mubr.msk.bf16.vlgmr.msra.gmra.mrb[20].mxu1 %vm46_vm1, %v1589_v1 }
0x112f   :  { %v1517_v3 = vpop.permute.xlu1 %1516 }
0x1130   :  { %v1525_v10 = vrot.slane %v1517_v3, %v2368_v2 }
0x1132   :  { %v1526_v11 = vsel %vm1411_vm4, %v1525_v10, %v1521_v7 }
0x1133   :  { %v1527_v13 = vpack.c.b16 %v1526_v11, %v1526_v11 }
0x1135   :  { %1911 = vmatmul.mubr.msk.bf16.vlgmr.msra.gmra.mrb[36].mxu0 %vm46_vm1, %v1527_v13 }
0x1200   :  { %v1627_v33 = vpop.f32.mrb[20].mxu1 }
0x1201   :  { %v1918_v16 = vpop.f32.mrb[21].mxu1  ;;  %v1638_v19 = vmul.f32 %v1636_v8, %v1627_v33 }
0x1202   :  { %v1630_v17 = vpop.f32.mrb[22].mxu1 }
0x1203   :  { %v1919_v18 = vpop.f32.mrb[23].mxu1  ;;  %v1641_v21 = vrot.slane %v1638_v19, 7 }
0x1208   :  { %v1565_v20 = vpop.f32.mrb[36].mxu0 }
0x1209   :  { %v1637_v22 = vmul.f32 %v1636_v8, %v1565_v20  ;;  %v1912_v6 = vpop.f32.mrb[37].mxu0 }
0x120a   :  { %v1568_v2 = vpop.f32.mrb[38].mxu0 }
0x120b   :  { %v1913_v24 = vpop.f32.mrb[39].mxu0  ;;  %v1642_v26 = vsel %vm1422_vm5, %v1641_v21, %v1637_v22 }
0x120c   :  { %v1645_v5 = vsel %vm1644_vm7, %v1642_v26, 0.0 }
0x120d   :  { %1646 = vadd.xlane.f32.xlu1 %v1645_v5 }
0x129a   :  { %v1647_v34 = vpop.xlane.xlu1 %1646 }
0x129b   :  { %v1648_v15 = vadd.f32 %v1647_v34, %v2360_v58 }
0x129d   :  { %1651 = vperm.xlu0 %1942, %v1648_v15  }
0x131c   :  { %v1652_v27 = vpop.permute.xlu0 %1651 }
0x131d   :  { %1654 = vst [vmem:[%s2415_s7] sm:$0x3] %v1652_v27 }

</bundles_post_ra>
